<compile_context>
chip_gen: v5e
topology: v5e:2x2
jax: 0.10.0
libtpu: 0.0.40
codegen_flags: <defaults>
</compile_context>

<pallas_src>
import jax
import jax.numpy as jnp
from jax import lax
from jax.experimental import pallas as pl
from jax.experimental.pallas import tpu as pltpu

# ----------------------------- configuration (the "args") -----------------------------
BATCH = 2            # args.batchSize == runtime batch (no padding path, diff == 0)
FEATURE = 8          # featureNum
OUTPUT = 4           # outputNum
WINDOW = 16          # args.window
HW = 4               # args.highway_window
HIDC = 8             # args.hidC
HIDLSTM = 32         # args.hidLSTM
CK = 3               # args.kernelCNN
DIMFC = 16           # args.dimFC
TPRIME = WINDOW - CK + 1   # conv output length along the time axis


# -------------------------- packed weight-slab layout (one DMA) ------------------------
def _ceil8(n):
    return ((n + 7) // 8) * 8


_SLAB_FIELDS = [
    # name,      rows,              cols
    ("w_ih",     FEATURE,           4 * HIDLSTM),       # LSTM W_ih^T
    ("w_hh",     HIDLSTM,           4 * HIDLSTM),       # LSTM W_hh^T
    ("b_lstm",   1,                 4 * HIDLSTM),       # bias_ih + bias_hh
    ("perm",     WINDOW * BATCH,    BATCH * WINDOW),    # batch-major -> time-major reorder
    ("conv_w",   CK * HIDLSTM,      HIDC),              # CK conv taps, (H, hidC) each
    ("conv_b",   1,                 HIDC),
    ("att_t",    BATCH * HIDLSTM,   BATCH * HIDC),      # blockdiag(att[b]^T)
    ("fsm_t",    BATCH * HIDLSTM,   BATCH * HIDLSTM),   # blockdiag(fsm[b]^T)
    ("cvm_t",    BATCH * HIDC,      BATCH * HIDLSTM),   # blockdiag(cvm[b]^T)
    ("fm_t",     BATCH * HIDLSTM,   BATCH * FEATURE),   # blockdiag(fm[b]^T)
    ("s_hw",     BATCH,             BATCH * WINDOW),    # highway taps as a matmul
    ("w0",       FEATURE,           DIMFC),
    ("b0",       1,                 DIMFC),             # FC0 bias (+ folded highway bias)
    ("w1",       DIMFC,             DIMFC),
    ("b1",       1,                 DIMFC),
    ("w2",       DIMFC,             OUTPUT),
    ("b2",       1,                 OUTPUT),
]

_SLAB_OFF = {}
_SLAB_SHAPE = {}
_row = 0
for _n, _r, _c in _SLAB_FIELDS:
    _SLAB_OFF[_n] = _row
    _SLAB_SHAPE[_n] = (_r, _c)
    _row += _ceil8(_r)          # every block starts on a sublane-aligned row
SLAB_ROWS = _row                # 464
SLAB_COLS = 4 * HIDLSTM         # 128 lanes (lane-dense for the LSTM weights)


# ------------------------------ fused forward-pass kernel ------------------------------
def tpalstm_kernel(x_ref, slab_ref, out_ref, h_hist):
    B, T, H = BATCH, WINDOW, HIDLSTM
    f32, bf16 = jnp.float32, jnp.bfloat16

    def blk(name):
        r0 = _SLAB_OFF[name]
        r, c = _SLAB_SHAPE[name]
        return slab_ref[r0:r0 + r, 0:c]

    def bdot(a, b):
        # single-pass bf16 MXU matmul with f32 accumulation
        return jnp.dot(a.astype(bf16), b.astype(bf16), preferred_element_type=f32)

    # ---- Stage 0: in-kernel time-major reorder of the input (replaces host transpose)
    x_bm = x_ref[...]                                    # (B*T, F), row = b*T + t
    x_tm = bdot(blk("perm"), x_bm)                       # (T*B, F), row = t*B + b

    # -------- Stage 1: LSTM recurrence (fully unrolled; only h @ W_hh is serial) ------
    gx = bdot(x_tm, blk("w_ih")) + blk("b_lstm")         # (T*B, 4H) hoisted projection
    whh_bf = blk("w_hh").astype(bf16)                    # loop-invariant, cast once

    h = jnp.zeros((B, H), f32)
    c = jnp.zeros((B, H), f32)
    # (If the compiler ever reports vreg spills here, switch to lax.fori_loop with
    #  pl.ds(t*B, B) indexing; at T=16 the unroll fits comfortably.)
    for t in range(T):
        gates = gx[t * B:(t + 1) * B, :] + jnp.dot(
            h.astype(bf16), whh_bf, preferred_element_type=f32)
        sg = jax.nn.sigmoid(gates)                       # one EUP pass over (B, 4H)
        gi = sg[:, 0 * H:1 * H]
        gf = sg[:, 1 * H:2 * H]
        go = sg[:, 3 * H:4 * H]
        gg = jnp.tanh(gates[:, 2 * H:3 * H])
        c = gf * c + gi * gg
        h = go * jnp.tanh(c)
        h_hist[t * B:(t + 1) * B, :] = h                 # ONE contiguous (B, H) store
    hn = h                                               # (B, H) final hidden state

    # ------- Stage 2: conv + ReLU + attention + bmm chain (batched over the batch) ----
    acc = jnp.zeros((TPRIME * B, HIDC), f32)
    for k in range(CK):                                  # CK tap matmuls, both batches
        r0 = _SLAB_OFF["conv_w"] + k * H
        acc = acc + bdot(h_hist[k * B:(k + TPRIME) * B, :], slab_ref[r0:r0 + H, 0:HIDC])
    cs = jnp.maximum(acc + blk("conv_b"), 0.0)           # (T'*B, hidC), row = t'*B + b
    # dropout == identity (inference)

    # stacked hn as a (1, B*H) row vector for the block-diagonal weights
    hn_stack = jnp.concatenate([hn[b:b + 1, :] for b in range(B)], axis=1)    # (1, B*H)

    # reassociated attention: v_b = att[b] @ hn_b^T, then score = cs_b @ v_b
    v_all = bdot(hn_stack, blk("att_t"))                                      # (1, B*hidC)
    vmat_t = jnp.concatenate([v_all[:, b * HIDC:(b + 1) * HIDC]
                              for b in range(B)], axis=0)                     # (B, hidC)

    scores = lax.dot_general(cs.astype(jnp.bfloat16), vmat_t.astype(jnp.bfloat16),
                             dimension_numbers=(((1,), (1,)), ((), ())),
                             preferred_element_type=f32)                      # (T'*B, B)
    rmod = lax.broadcasted_iota(jnp.int32, (TPRIME * B, B), 0) % B
    cidx = lax.broadcasted_iota(jnp.int32, (TPRIME * B, B), 1)
    score = jnp.sum(jnp.where(rmod == cidx, scores, 0.0), axis=1, keepdims=True)
    alpha = jax.nn.sigmoid(score)                                             # (T'*B, 1)
    weighted = alpha * cs                                                     # (T'*B, hidC)

    # per-batch context sums via a constant selection matmul (handles the interleave)
    brow = lax.broadcasted_iota(jnp.int32, (B, TPRIME * B), 0)
    rcol = lax.broadcasted_iota(jnp.int32, (B, TPRIME * B), 1)
    s_ctx = jnp.where(rcol % B == brow, 1.0, 0.0)                             # (B, T'*B)
    ctx = bdot(s_ctx, weighted)                                               # (B, hidC)
    ctx_stack = jnp.concatenate([ctx[b:b + 1, :] for b in range(B)], axis=1)  # (1, B*hidC)

    # block-diagonal per-batch bmm chain: 3 matmuls instead of 3*B
    h_int = bdot(hn_stack, blk("fsm_t")) + bdot(ctx_stack, blk("cvm_t"))      # (1, B*H)
    res_flat = bdot(h_int, blk("fm_t"))                                       # (1, B*F)
    result = jnp.concatenate([res_flat[:, b * FEATURE:(b + 1) * FEATURE]
                              for b in range(B)], axis=0)                     # (B, F)

    # ---------------------- Stage 3: highway + FC head (whole batch) -------------------
    z = jnp.dot(blk("s_hw"), x_bm, preferred_element_type=f32)                # (B, F)
    xfc = result + z                       # highway bias is folded into b0 host-side
    h0 = jnp.tanh(jnp.dot(xfc, blk("w0"), preferred_element_type=f32) + blk("b0"))
    # dropout == identity (inference)
    h1 = jnp.tanh(jnp.dot(h0, blk("w1"), preferred_element_type=f32) + blk("b1"))
    out_ref[...] = jnp.dot(h1, blk("w2"), preferred_element_type=f32) + blk("b2")


# ------------------------------------ forward wrapper ----------------------------------
def tpalstm_forward(x, kp):
    # x: (B, WINDOW, FEATURE).  Free (metadata-only) reshape to batch-major rows
    # b*T + t; the time-major reorder happens inside the kernel (no transpose HLO).
    x_bm = x.reshape(BATCH * WINDOW, FEATURE)

    vmem = pl.BlockSpec(memory_space=pltpu.MemorySpace.VMEM)
    return pl.pallas_call(
        tpalstm_kernel,
        out_shape=jax.ShapeDtypeStruct((BATCH, OUTPUT), jnp.float32),
        in_specs=[vmem, vmem],                              # x + one packed weight slab
        out_specs=pl.BlockSpec(memory_space=pltpu.MemorySpace.VMEM),
        scratch_shapes=[pltpu.VMEM((WINDOW * BATCH, HIDLSTM), jnp.float32)],
    )(x_bm, kp["slab"])


# ----------------------- deterministic params (PyTorch layouts) ------------------------
def init_params(key):
    ks = jax.random.split(key, 18)

    def u(k, shape, scale=0.1):
        return jax.random.uniform(k, shape, jnp.float32, -scale, scale)

    return dict(
        weight_ih=u(ks[0], (4 * HIDLSTM, FEATURE)),      # nn.LSTM weight_ih_l0
        weight_hh=u(ks[1], (4 * HIDLSTM, HIDLSTM)),      # nn.LSTM weight_hh_l0
        bias_ih=u(ks[2], (4 * HIDLSTM,)),
        bias_hh=u(ks[3], (4 * HIDLSTM,)),
        conv_w=u(ks[4], (HIDC, 1, CK, HIDLSTM)),         # nn.Conv2d weight
        conv_b=u(ks[5], (HIDC,)),
        att=u(ks[6], (BATCH, HIDC, HIDLSTM)),            # attention_matrix
        cvm=u(ks[7], (BATCH, HIDLSTM, HIDC)),            # context_vector_matrix
        fsm=u(ks[8], (BATCH, HIDLSTM, HIDLSTM)),         # final_state_matrix
        fm=u(ks[9], (BATCH, FEATURE, HIDLSTM)),          # final_matrix
        hw_w=u(ks[10], (1, HW)),                         # highway Linear(hw, 1)
        hw_b=u(ks[11], (1,)),
        fc0_w=u(ks[12], (DIMFC, FEATURE)), fc0_b=u(ks[13], (DIMFC,)),
        fc1_w=u(ks[14], (DIMFC, DIMFC)), fc1_b=u(ks[15], (DIMFC,)),
        fc2_w=u(ks[16], (OUTPUT, DIMFC)), fc2_b=u(ks[17], (OUTPUT,)),
    )


def _block_diag(mats):
    rows = sum(m.shape[0] for m in mats)
    cols = sum(m.shape[1] for m in mats)
    out = jnp.zeros((rows, cols), jnp.float32)
    r = c = 0
    for m in mats:
        out = out.at[r:r + m.shape[0], c:c + m.shape[1]].set(m)
        r += m.shape[0]
        c += m.shape[1]
    return out


def prepare_params(p):
    """One-time host-side conversion of PyTorch-layout params into a single packed slab."""
    f32 = jnp.float32
    T, B, H = WINDOW, BATCH, HIDLSTM

    w_ih = p["weight_ih"].T                                      # (F, 4H)
    w_hh = p["weight_hh"].T                                      # (H, 4H)
    b_lstm = (p["bias_ih"] + p["bias_hh"]).reshape(1, 4 * H)

    # permutation: x_tm[t*B + b, :] = x_bm[b*T + t, :]
    rows = jnp.arange(T * B)
    perm = jnp.zeros((T * B, B * T), f32).at[rows, (rows % B) * T + rows // B].set(1.0)

    # conv weight (hidC, 1, Ck, H) -> stacked (Ck*H, hidC) tap matrices
    conv_w = jnp.transpose(p["conv_w"][:, 0, :, :], (1, 2, 0)).reshape(CK * H, HIDC)
    conv_b = p["conv_b"].reshape(1, HIDC)

    att_t = _block_diag([p["att"][b].T for b in range(B)])       # (B*H, B*hidC)
    fsm_t = _block_diag([p["fsm"][b].T for b in range(B)])       # (B*H, B*H)
    cvm_t = _block_diag([p["cvm"][b].T for b in range(B)])       # (B*hidC, B*H)
    fm_t = _block_diag([p["fm"][b].T for b in range(B)])         # (B*H, B*F)

    # highway Linear(hw, 1) as a (B, B*T) tap matrix applied to batch-major x
    hw_w = p["hw_w"].reshape(HW)
    s_hw = jnp.zeros((B, B * T), f32)
    for b in range(B):
        s_hw = s_hw.at[b, b * T + T - HW:b * T + T].set(hw_w)

    w0 = p["fc0_w"].T
    w1 = p["fc1_w"].T
    w2 = p["fc2_w"].T
    # fold the highway bias (added uniformly to every FC0 input) into the FC0 bias
    b0 = p["fc0_b"].reshape(1, DIMFC) + p["hw_b"][0] * jnp.sum(w0, axis=0, keepdims=True)
    b1 = p["fc1_b"].reshape(1, DIMFC)
    b2 = p["fc2_b"].reshape(1, OUTPUT)

    blocks = dict(w_ih=w_ih, w_hh=w_hh, b_lstm=b_lstm, perm=perm,
                  conv_w=conv_w, conv_b=conv_b,
                  att_t=att_t, fsm_t=fsm_t, cvm_t=cvm_t, fm_t=fm_t,
                  s_hw=s_hw, w0=w0, b0=b0, w1=w1, b1=b1, w2=w2, b2=b2)

    slab = jnp.zeros((SLAB_ROWS, SLAB_COLS), f32)
    for name, r, c in _SLAB_FIELDS:
        blkv = blocks[name].astype(f32)
        assert blkv.shape == (r, c), (name, blkv.shape, (r, c))
        r0 = _SLAB_OFF[name]
        slab = slab.at[r0:r0 + r, 0:c].set(blkv)
    return dict(slab=slab)


# ------------------------------- pure-JAX f32 reference --------------------------------
def tpalstm_reference(x, p):
    with jax.default_matmul_precision("float32"):
        B, T, H = BATCH, WINDOW, HIDLSTM
        w_ih, w_hh = p["weight_ih"], p["weight_hh"]
        bias = p["bias_ih"] + p["bias_hh"]

        def step(carry, xt):
            h, c = carry
            g = xt @ w_ih.T + h @ w_hh.T + bias
            gi, gf, gg, go = jnp.split(g, 4, axis=-1)
            gi, gf, go = jax.nn.sigmoid(gi), jax.nn.sigmoid(gf), jax.nn.sigmoid(go)
            gg = jnp.tanh(gg)
            c = gf * c + gi * gg
            h = go * jnp.tanh(c)
            return (h, c), h

        x_tm = jnp.transpose(x, (1, 0, 2))                           # (T, B, F)
        (hn, _), hs = lax.scan(step, (jnp.zeros((B, H), jnp.float32),
                                      jnp.zeros((B, H), jnp.float32)), x_tm)
        hist = jnp.transpose(hs, (1, 0, 2))                          # (B, T, H)

        w = p["conv_w"][:, 0, :, :]                                  # (hidC, CK, H)
        conv = jnp.stack([sum(hist[:, t + k, :] @ w[:, k, :].T for k in range(CK))
                          for t in range(TPRIME)], axis=1) + p["conv_b"][None, None, :]
        cs = jax.nn.relu(conv)                                       # (B, T', hidC)

        mat1 = jnp.einsum('btc,bch->bth', cs, p["att"])
        score = jnp.einsum('bth,bh->bt', mat1, hn)[..., None]        # (B, T', 1)
        alpha = jax.nn.sigmoid(score)
        ctx = jnp.sum(alpha * cs, axis=1)                            # (B, hidC)
        h_int = (jnp.einsum('bij,bj->bi', p["fsm"], hn)
                 + jnp.einsum('bic,bc->bi', p["cvm"], ctx))          # (B, H)
        result = jnp.einsum('bfi,bi->bf', p["fm"], h_int)            # (B, F)

        z = jnp.einsum('k,bkf->bf', p["hw_w"][0], x[:, T - HW:, :]) + p["hw_b"][0]
        r = result + z
        h0 = jnp.tanh(r @ p["fc0_w"].T + p["fc0_b"])
        h1 = jnp.tanh(h0 @ p["fc1_w"].T + p["fc1_b"])
        return h1 @ p["fc2_w"].T + p["fc2_b"]


if __name__ == "__main__":
    key = jax.random.PRNGKey(0)
    pkey, xkey = jax.random.split(key)
    torch_layout_params = init_params(pkey)
    kparams = prepare_params(torch_layout_params)
    x = jax.random.normal(xkey, (BATCH, WINDOW, FEATURE), jnp.float32)

    fwd = jax.jit(tpalstm_forward)
    out = jax.block_until_ready(fwd(x, kparams))
    assert out.shape == (BATCH, OUTPUT), out.shape
    assert bool(jnp.all(jnp.isfinite(out)))

    # Sanity check against the f32 pure-JAX reference (loose tol: kernel uses bf16 MXU).
    ref = tpalstm_reference(x, torch_layout_params)
    err = float(jnp.max(jnp.abs(out - ref)))
    assert err < 1e-1, f"kernel/reference mismatch: max abs err = {err}"
    print("KERNEL_OK")
</pallas_src>

<mosaic_0001>
module attributes {stable_mosaic.version = 11 : i64} {
  func.func @tpalstm_kernel(%arg0: memref<32x8xf32, #tpu.memory_space<vmem>>, %arg1: memref<464x128xf32, #tpu.memory_space<vmem>>, %arg2: memref<2x4xf32, #tpu.memory_space<vmem>>, %arg3: memref<32x32xf32, #tpu.memory_space<vmem>>) attributes {dimension_semantics = [], scalar_prefetch = 0 : i64, scratch_operands = 1 : i64, tpu.core_type = #tpu.core_type<tc>} {
    %c0 = arith.constant 0 : index
    %c0_0 = arith.constant 0 : index
    %0 = vector.load %arg0[%c0, %c0_0] : memref<32x8xf32, #tpu.memory_space<vmem>>, vector<32x8xf32>
    %c48 = arith.constant 48 : index
    %c0_1 = arith.constant 0 : index
    %1 = vector.load %arg1[%c48, %c0_1] : memref<464x128xf32, #tpu.memory_space<vmem>>, vector<32x32xf32>
    %2 = arith.truncf %1 : vector<32x32xf32> to vector<32x32xbf16>
    %3 = arith.truncf %0 : vector<32x8xf32> to vector<32x8xbf16>
    %cst = arith.constant dense<0.000000e+00> : vector<32x8xf32>
    %4 = tpu.matmul %2, %3, %cst {dimension_numbers = #tpu.dot_dimension_numbers<[1], [0], [0], [1], [0, 0, 1, 1], [], []>} : vector<32x32xbf16>, vector<32x8xbf16>, vector<32x8xf32> -> vector<32x8xf32>
    %c0_2 = arith.constant 0 : index
    %c0_3 = arith.constant 0 : index
    %5 = vector.load %arg1[%c0_2, %c0_3] : memref<464x128xf32, #tpu.memory_space<vmem>>, vector<8x128xf32>
    %6 = arith.truncf %4 : vector<32x8xf32> to vector<32x8xbf16>
    %7 = arith.truncf %5 : vector<8x128xf32> to vector<8x128xbf16>
    %cst_4 = arith.constant dense<0.000000e+00> : vector<32x128xf32>
    %8 = tpu.matmul %6, %7, %cst_4 {dimension_numbers = #tpu.dot_dimension_numbers<[1], [0], [0], [1], [0, 0, 1, 1], [], []>} : vector<32x8xbf16>, vector<8x128xbf16>, vector<32x128xf32> -> vector<32x128xf32>
    %c40 = arith.constant 40 : index
    %c0_5 = arith.constant 0 : index
    %9 = vector.load %arg1[%c40, %c0_5] : memref<464x128xf32, #tpu.memory_space<vmem>>, vector<1x128xf32>
    %10 = vector.broadcast %9 : vector<1x128xf32> to vector<32x128xf32>
    %11 = arith.addf %8, %10 : vector<32x128xf32>
    %c8 = arith.constant 8 : index
    %c0_6 = arith.constant 0 : index
    %12 = vector.load %arg1[%c8, %c0_6] : memref<464x128xf32, #tpu.memory_space<vmem>>, vector<32x128xf32>
    %13 = arith.truncf %12 : vector<32x128xf32> to vector<32x128xbf16>
    %cst_7 = arith.constant 0.000000e+00 : f32
    %14 = vector.broadcast %cst_7 : f32 to vector<2x32xf32>
    %cst_8 = arith.constant 0.000000e+00 : f32
    %15 = vector.broadcast %cst_8 : f32 to vector<2x32xf32>
    %16 = vector.extract_strided_slice %11 {offsets = [0, 0], sizes = [2, 128], strides = [1, 1]} : vector<32x128xf32> to vector<2x128xf32>
    %17 = arith.truncf %14 : vector<2x32xf32> to vector<2x32xbf16>
    %cst_9 = arith.constant dense<0.000000e+00> : vector<2x128xf32>
    %18 = tpu.matmul %17, %13, %cst_9 {dimension_numbers = #tpu.dot_dimension_numbers<[1], [0], [0], [1], [0, 0, 1, 1], [], []>} : vector<2x32xbf16>, vector<32x128xbf16>, vector<2x128xf32> -> vector<2x128xf32>
    %19 = arith.addf %16, %18 : vector<2x128xf32>
    %20 = arith.negf %19 : vector<2x128xf32>
    %21 = math.exp %20 : vector<2x128xf32>
    %cst_10 = arith.constant 1.000000e+00 : f32
    %22 = vector.broadcast %cst_10 : f32 to vector<2x128xf32>
    %23 = arith.addf %22, %21 : vector<2x128xf32>
    %24 = arith.divf %22, %23 : vector<2x128xf32>
    %25 = vector.extract_strided_slice %24 {offsets = [0, 0], sizes = [2, 32], strides = [1, 1]} : vector<2x128xf32> to vector<2x32xf32>
    %26 = vector.extract_strided_slice %24 {offsets = [0, 32], sizes = [2, 32], strides = [1, 1]} : vector<2x128xf32> to vector<2x32xf32>
    %27 = vector.extract_strided_slice %24 {offsets = [0, 96], sizes = [2, 32], strides = [1, 1]} : vector<2x128xf32> to vector<2x32xf32>
    %28 = vector.extract_strided_slice %19 {offsets = [0, 64], sizes = [2, 32], strides = [1, 1]} : vector<2x128xf32> to vector<2x32xf32>
    %29 = math.tanh %28 : vector<2x32xf32>
    %30 = arith.mulf %26, %15 : vector<2x32xf32>
    %31 = arith.mulf %25, %29 : vector<2x32xf32>
    %32 = arith.addf %30, %31 : vector<2x32xf32>
    %33 = math.tanh %32 : vector<2x32xf32>
    %34 = arith.mulf %27, %33 : vector<2x32xf32>
    %c0_11 = arith.constant 0 : index
    %c0_12 = arith.constant 0 : index
    %35 = vector.load %arg3[%c0_11, %c0_12] : memref<32x32xf32, #tpu.memory_space<vmem>>, vector<2x32xf32>
    tpu.vector_store %arg3[%c0_11, %c0_12], %34 {strides = array<i32>} : memref<32x32xf32, #tpu.memory_space<vmem>>, vector<2x32xf32>,
    %36 = vector.extract_strided_slice %11 {offsets = [2, 0], sizes = [2, 128], strides = [1, 1]} : vector<32x128xf32> to vector<2x128xf32>
    %37 = arith.truncf %34 : vector<2x32xf32> to vector<2x32xbf16>
    %cst_13 = arith.constant dense<0.000000e+00> : vector<2x128xf32>
    %38 = tpu.matmul %37, %13, %cst_13 {dimension_numbers = #tpu.dot_dimension_numbers<[1], [0], [0], [1], [0, 0, 1, 1], [], []>} : vector<2x32xbf16>, vector<32x128xbf16>, vector<2x128xf32> -> vector<2x128xf32>
    %39 = arith.addf %36, %38 : vector<2x128xf32>
    %40 = arith.negf %39 : vector<2x128xf32>
    %41 = math.exp %40 : vector<2x128xf32>
    %cst_14 = arith.constant 1.000000e+00 : f32
    %42 = vector.broadcast %cst_14 : f32 to vector<2x128xf32>
    %43 = arith.addf %42, %41 : vector<2x128xf32>
    %44 = arith.divf %42, %43 : vector<2x128xf32>
    %45 = vector.extract_strided_slice %44 {offsets = [0, 0], sizes = [2, 32], strides = [1, 1]} : vector<2x128xf32> to vector<2x32xf32>
    %46 = vector.extract_strided_slice %44 {offsets = [0, 32], sizes = [2, 32], strides = [1, 1]} : vector<2x128xf32> to vector<2x32xf32>
    %47 = vector.extract_strided_slice %44 {offsets = [0, 96], sizes = [2, 32], strides = [1, 1]} : vector<2x128xf32> to vector<2x32xf32>
    %48 = vector.extract_strided_slice %39 {offsets = [0, 64], sizes = [2, 32], strides = [1, 1]} : vector<2x128xf32> to vector<2x32xf32>
    %49 = math.tanh %48 : vector<2x32xf32>
    %50 = arith.mulf %46, %32 : vector<2x32xf32>
    %51 = arith.mulf %45, %49 : vector<2x32xf32>
    %52 = arith.addf %50, %51 : vector<2x32xf32>
    %53 = math.tanh %52 : vector<2x32xf32>
    %54 = arith.mulf %47, %53 : vector<2x32xf32>
    %c2 = arith.constant 2 : index
    %c0_15 = arith.constant 0 : index
    %55 = vector.load %arg3[%c2, %c0_15] : memref<32x32xf32, #tpu.memory_space<vmem>>, vector<2x32xf32>
    tpu.vector_store %arg3[%c2, %c0_15], %54 {strides = array<i32>} : memref<32x32xf32, #tpu.memory_space<vmem>>, vector<2x32xf32>,
    %56 = vector.extract_strided_slice %11 {offsets = [4, 0], sizes = [2, 128], strides = [1, 1]} : vector<32x128xf32> to vector<2x128xf32>
    %57 = arith.truncf %54 : vector<2x32xf32> to vector<2x32xbf16>
    %cst_16 = arith.constant dense<0.000000e+00> : vector<2x128xf32>
    %58 = tpu.matmul %57, %13, %cst_16 {dimension_numbers = #tpu.dot_dimension_numbers<[1], [0], [0], [1], [0, 0, 1, 1], [], []>} : vector<2x32xbf16>, vector<32x128xbf16>, vector<2x128xf32> -> vector<2x128xf32>
    %59 = arith.addf %56, %58 : vector<2x128xf32>
    %60 = arith.negf %59 : vector<2x128xf32>
    %61 = math.exp %60 : vector<2x128xf32>
    %cst_17 = arith.constant 1.000000e+00 : f32
    %62 = vector.broadcast %cst_17 : f32 to vector<2x128xf32>
    %63 = arith.addf %62, %61 : vector<2x128xf32>
    %64 = arith.divf %62, %63 : vector<2x128xf32>
    %65 = vector.extract_strided_slice %64 {offsets = [0, 0], sizes = [2, 32], strides = [1, 1]} : vector<2x128xf32> to vector<2x32xf32>
    %66 = vector.extract_strided_slice %64 {offsets = [0, 32], sizes = [2, 32], strides = [1, 1]} : vector<2x128xf32> to vector<2x32xf32>
    %67 = vector.extract_strided_slice %64 {offsets = [0, 96], sizes = [2, 32], strides = [1, 1]} : vector<2x128xf32> to vector<2x32xf32>
    %68 = vector.extract_strided_slice %59 {offsets = [0, 64], sizes = [2, 32], strides = [1, 1]} : vector<2x128xf32> to vector<2x32xf32>
    %69 = math.tanh %68 : vector<2x32xf32>
    %70 = arith.mulf %66, %52 : vector<2x32xf32>
    %71 = arith.mulf %65, %69 : vector<2x32xf32>
    %72 = arith.addf %70, %71 : vector<2x32xf32>
    %73 = math.tanh %72 : vector<2x32xf32>
    %74 = arith.mulf %67, %73 : vector<2x32xf32>
    %c4 = arith.constant 4 : index
    %c0_18 = arith.constant 0 : index
    %75 = vector.load %arg3[%c4, %c0_18] : memref<32x32xf32, #tpu.memory_space<vmem>>, vector<2x32xf32>
    tpu.vector_store %arg3[%c4, %c0_18], %74 {strides = array<i32>} : memref<32x32xf32, #tpu.memory_space<vmem>>, vector<2x32xf32>,
    %76 = vector.extract_strided_slice %11 {offsets = [6, 0], sizes = [2, 128], strides = [1, 1]} : vector<32x128xf32> to vector<2x128xf32>
    %77 = arith.truncf %74 : vector<2x32xf32> to vector<2x32xbf16>
    %cst_19 = arith.constant dense<0.000000e+00> : vector<2x128xf32>
    %78 = tpu.matmul %77, %13, %cst_19 {dimension_numbers = #tpu.dot_dimension_numbers<[1], [0], [0], [1], [0, 0, 1, 1], [], []>} : vector<2x32xbf16>, vector<32x128xbf16>, vector<2x128xf32> -> vector<2x128xf32>
    %79 = arith.addf %76, %78 : vector<2x128xf32>
    %80 = arith.negf %79 : vector<2x128xf32>
    %81 = math.exp %80 : vector<2x128xf32>
    %cst_20 = arith.constant 1.000000e+00 : f32
    %82 = vector.broadcast %cst_20 : f32 to vector<2x128xf32>
    %83 = arith.addf %82, %81 : vector<2x128xf32>
    %84 = arith.divf %82, %83 : vector<2x128xf32>
    %85 = vector.extract_strided_slice %84 {offsets = [0, 0], sizes = [2, 32], strides = [1, 1]} : vector<2x128xf32> to vector<2x32xf32>
    %86 = vector.extract_strided_slice %84 {offsets = [0, 32], sizes = [2, 32], strides = [1, 1]} : vector<2x128xf32> to vector<2x32xf32>
    %87 = vector.extract_strided_slice %84 {offsets = [0, 96], sizes = [2, 32], strides = [1, 1]} : vector<2x128xf32> to vector<2x32xf32>
    %88 = vector.extract_strided_slice %79 {offsets = [0, 64], sizes = [2, 32], strides = [1, 1]} : vector<2x128xf32> to vector<2x32xf32>
    %89 = math.tanh %88 : vector<2x32xf32>
    %90 = arith.mulf %86, %72 : vector<2x32xf32>
    %91 = arith.mulf %85, %89 : vector<2x32xf32>
    %92 = arith.addf %90, %91 : vector<2x32xf32>
    %93 = math.tanh %92 : vector<2x32xf32>
    %94 = arith.mulf %87, %93 : vector<2x32xf32>
    %c6 = arith.constant 6 : index
    %c0_21 = arith.constant 0 : index
    %95 = vector.load %arg3[%c6, %c0_21] : memref<32x32xf32, #tpu.memory_space<vmem>>, vector<2x32xf32>
    tpu.vector_store %arg3[%c6, %c0_21], %94 {strides = array<i32>} : memref<32x32xf32, #tpu.memory_space<vmem>>, vector<2x32xf32>,
    %96 = vector.extract_strided_slice %11 {offsets = [8, 0], sizes = [2, 128], strides = [1, 1]} : vector<32x128xf32> to vector<2x128xf32>
    %97 = arith.truncf %94 : vector<2x32xf32> to vector<2x32xbf16>
    %cst_22 = arith.constant dense<0.000000e+00> : vector<2x128xf32>
    %98 = tpu.matmul %97, %13, %cst_22 {dimension_numbers = #tpu.dot_dimension_numbers<[1], [0], [0], [1], [0, 0, 1, 1], [], []>} : vector<2x32xbf16>, vector<32x128xbf16>, vector<2x128xf32> -> vector<2x128xf32>
    %99 = arith.addf %96, %98 : vector<2x128xf32>
    %100 = arith.negf %99 : vector<2x128xf32>
    %101 = math.exp %100 : vector<2x128xf32>
    %cst_23 = arith.constant 1.000000e+00 : f32
    %102 = vector.broadcast %cst_23 : f32 to vector<2x128xf32>
    %103 = arith.addf %102, %101 : vector<2x128xf32>
    %104 = arith.divf %102, %103 : vector<2x128xf32>
    %105 = vector.extract_strided_slice %104 {offsets = [0, 0], sizes = [2, 32], strides = [1, 1]} : vector<2x128xf32> to vector<2x32xf32>
    %106 = vector.extract_strided_slice %104 {offsets = [0, 32], sizes = [2, 32], strides = [1, 1]} : vector<2x128xf32> to vector<2x32xf32>
    %107 = vector.extract_strided_slice %104 {offsets = [0, 96], sizes = [2, 32], strides = [1, 1]} : vector<2x128xf32> to vector<2x32xf32>
    %108 = vector.extract_strided_slice %99 {offsets = [0, 64], sizes = [2, 32], strides = [1, 1]} : vector<2x128xf32> to vector<2x32xf32>
    %109 = math.tanh %108 : vector<2x32xf32>
    %110 = arith.mulf %106, %92 : vector<2x32xf32>
    %111 = arith.mulf %105, %109 : vector<2x32xf32>
    %112 = arith.addf %110, %111 : vector<2x32xf32>
    %113 = math.tanh %112 : vector<2x32xf32>
    %114 = arith.mulf %107, %113 : vector<2x32xf32>
    %c8_24 = arith.constant 8 : index
    %c0_25 = arith.constant 0 : index
    %115 = vector.load %arg3[%c8_24, %c0_25] : memref<32x32xf32, #tpu.memory_space<vmem>>, vector<2x32xf32>
    tpu.vector_store %arg3[%c8_24, %c0_25], %114 {strides = array<i32>} : memref<32x32xf32, #tpu.memory_space<vmem>>, vector<2x32xf32>,
    %116 = vector.extract_strided_slice %11 {offsets = [10, 0], sizes = [2, 128], strides = [1, 1]} : vector<32x128xf32> to vector<2x128xf32>
    %117 = arith.truncf %114 : vector<2x32xf32> to vector<2x32xbf16>
    %cst_26 = arith.constant dense<0.000000e+00> : vector<2x128xf32>
    %118 = tpu.matmul %117, %13, %cst_26 {dimension_numbers = #tpu.dot_dimension_numbers<[1], [0], [0], [1], [0, 0, 1, 1], [], []>} : vector<2x32xbf16>, vector<32x128xbf16>, vector<2x128xf32> -> vector<2x128xf32>
    %119 = arith.addf %116, %118 : vector<2x128xf32>
    %120 = arith.negf %119 : vector<2x128xf32>
    %121 = math.exp %120 : vector<2x128xf32>
    %cst_27 = arith.constant 1.000000e+00 : f32
    %122 = vector.broadcast %cst_27 : f32 to vector<2x128xf32>
    %123 = arith.addf %122, %121 : vector<2x128xf32>
    %124 = arith.divf %122, %123 : vector<2x128xf32>
    %125 = vector.extract_strided_slice %124 {offsets = [0, 0], sizes = [2, 32], strides = [1, 1]} : vector<2x128xf32> to vector<2x32xf32>
    %126 = vector.extract_strided_slice %124 {offsets = [0, 32], sizes = [2, 32], strides = [1, 1]} : vector<2x128xf32> to vector<2x32xf32>
    %127 = vector.extract_strided_slice %124 {offsets = [0, 96], sizes = [2, 32], strides = [1, 1]} : vector<2x128xf32> to vector<2x32xf32>
    %128 = vector.extract_strided_slice %119 {offsets = [0, 64], sizes = [2, 32], strides = [1, 1]} : vector<2x128xf32> to vector<2x32xf32>
    %129 = math.tanh %128 : vector<2x32xf32>
    %130 = arith.mulf %126, %112 : vector<2x32xf32>
    %131 = arith.mulf %125, %129 : vector<2x32xf32>
    %132 = arith.addf %130, %131 : vector<2x32xf32>
    %133 = math.tanh %132 : vector<2x32xf32>
    %134 = arith.mulf %127, %133 : vector<2x32xf32>
    %c10 = arith.constant 10 : index
    %c0_28 = arith.constant 0 : index
    %135 = vector.load %arg3[%c10, %c0_28] : memref<32x32xf32, #tpu.memory_space<vmem>>, vector<2x32xf32>
    tpu.vector_store %arg3[%c10, %c0_28], %134 {strides = array<i32>} : memref<32x32xf32, #tpu.memory_space<vmem>>, vector<2x32xf32>,
    %136 = vector.extract_strided_slice %11 {offsets = [12, 0], sizes = [2, 128], strides = [1, 1]} : vector<32x128xf32> to vector<2x128xf32>
    %137 = arith.truncf %134 : vector<2x32xf32> to vector<2x32xbf16>
    %cst_29 = arith.constant dense<0.000000e+00> : vector<2x128xf32>
    %138 = tpu.matmul %137, %13, %cst_29 {dimension_numbers = #tpu.dot_dimension_numbers<[1], [0], [0], [1], [0, 0, 1, 1], [], []>} : vector<2x32xbf16>, vector<32x128xbf16>, vector<2x128xf32> -> vector<2x128xf32>
    %139 = arith.addf %136, %138 : vector<2x128xf32>
    %140 = arith.negf %139 : vector<2x128xf32>
    %141 = math.exp %140 : vector<2x128xf32>
    %cst_30 = arith.constant 1.000000e+00 : f32
    %142 = vector.broadcast %cst_30 : f32 to vector<2x128xf32>
    %143 = arith.addf %142, %141 : vector<2x128xf32>
    %144 = arith.divf %142, %143 : vector<2x128xf32>
    %145 = vector.extract_strided_slice %144 {offsets = [0, 0], sizes = [2, 32], strides = [1, 1]} : vector<2x128xf32> to vector<2x32xf32>
    %146 = vector.extract_strided_slice %144 {offsets = [0, 32], sizes = [2, 32], strides = [1, 1]} : vector<2x128xf32> to vector<2x32xf32>
    %147 = vector.extract_strided_slice %144 {offsets = [0, 96], sizes = [2, 32], strides = [1, 1]} : vector<2x128xf32> to vector<2x32xf32>
    %148 = vector.extract_strided_slice %139 {offsets = [0, 64], sizes = [2, 32], strides = [1, 1]} : vector<2x128xf32> to vector<2x32xf32>
    %149 = math.tanh %148 : vector<2x32xf32>
    %150 = arith.mulf %146, %132 : vector<2x32xf32>
    %151 = arith.mulf %145, %149 : vector<2x32xf32>
    %152 = arith.addf %150, %151 : vector<2x32xf32>
    %153 = math.tanh %152 : vector<2x32xf32>
    %154 = arith.mulf %147, %153 : vector<2x32xf32>
    %c12 = arith.constant 12 : index
    %c0_31 = arith.constant 0 : index
    %155 = vector.load %arg3[%c12, %c0_31] : memref<32x32xf32, #tpu.memory_space<vmem>>, vector<2x32xf32>
    tpu.vector_store %arg3[%c12, %c0_31], %154 {strides = array<i32>} : memref<32x32xf32, #tpu.memory_space<vmem>>, vector<2x32xf32>,
    %156 = vector.extract_strided_slice %11 {offsets = [14, 0], sizes = [2, 128], strides = [1, 1]} : vector<32x128xf32> to vector<2x128xf32>
    %157 = arith.truncf %154 : vector<2x32xf32> to vector<2x32xbf16>
    %cst_32 = arith.constant dense<0.000000e+00> : vector<2x128xf32>
    %158 = tpu.matmul %157, %13, %cst_32 {dimension_numbers = #tpu.dot_dimension_numbers<[1], [0], [0], [1], [0, 0, 1, 1], [], []>} : vector<2x32xbf16>, vector<32x128xbf16>, vector<2x128xf32> -> vector<2x128xf32>
    %159 = arith.addf %156, %158 : vector<2x128xf32>
    %160 = arith.negf %159 : vector<2x128xf32>
    %161 = math.exp %160 : vector<2x128xf32>
    %cst_33 = arith.constant 1.000000e+00 : f32
    %162 = vector.broadcast %cst_33 : f32 to vector<2x128xf32>
    %163 = arith.addf %162, %161 : vector<2x128xf32>
    %164 = arith.divf %162, %163 : vector<2x128xf32>
    %165 = vector.extract_strided_slice %164 {offsets = [0, 0], sizes = [2, 32], strides = [1, 1]} : vector<2x128xf32> to vector<2x32xf32>
    %166 = vector.extract_strided_slice %164 {offsets = [0, 32], sizes = [2, 32], strides = [1, 1]} : vector<2x128xf32> to vector<2x32xf32>
    %167 = vector.extract_strided_slice %164 {offsets = [0, 96], sizes = [2, 32], strides = [1, 1]} : vector<2x128xf32> to vector<2x32xf32>
    %168 = vector.extract_strided_slice %159 {offsets = [0, 64], sizes = [2, 32], strides = [1, 1]} : vector<2x128xf32> to vector<2x32xf32>
    %169 = math.tanh %168 : vector<2x32xf32>
    %170 = arith.mulf %166, %152 : vector<2x32xf32>
    %171 = arith.mulf %165, %169 : vector<2x32xf32>
    %172 = arith.addf %170, %171 : vector<2x32xf32>
    %173 = math.tanh %172 : vector<2x32xf32>
    %174 = arith.mulf %167, %173 : vector<2x32xf32>
    %c14 = arith.constant 14 : index
    %c0_34 = arith.constant 0 : index
    %175 = vector.load %arg3[%c14, %c0_34] : memref<32x32xf32, #tpu.memory_space<vmem>>, vector<2x32xf32>
    tpu.vector_store %arg3[%c14, %c0_34], %174 {strides = array<i32>} : memref<32x32xf32, #tpu.memory_space<vmem>>, vector<2x32xf32>,
    %176 = vector.extract_strided_slice %11 {offsets = [16, 0], sizes = [2, 128], strides = [1, 1]} : vector<32x128xf32> to vector<2x128xf32>
    %177 = arith.truncf %174 : vector<2x32xf32> to vector<2x32xbf16>
    %cst_35 = arith.constant dense<0.000000e+00> : vector<2x128xf32>
    %178 = tpu.matmul %177, %13, %cst_35 {dimension_numbers = #tpu.dot_dimension_numbers<[1], [0], [0], [1], [0, 0, 1, 1], [], []>} : vector<2x32xbf16>, vector<32x128xbf16>, vector<2x128xf32> -> vector<2x128xf32>
    %179 = arith.addf %176, %178 : vector<2x128xf32>
    %180 = arith.negf %179 : vector<2x128xf32>
    %181 = math.exp %180 : vector<2x128xf32>
    %cst_36 = arith.constant 1.000000e+00 : f32
    %182 = vector.broadcast %cst_36 : f32 to vector<2x128xf32>
    %183 = arith.addf %182, %181 : vector<2x128xf32>
    %184 = arith.divf %182, %183 : vector<2x128xf32>
    %185 = vector.extract_strided_slice %184 {offsets = [0, 0], sizes = [2, 32], strides = [1, 1]} : vector<2x128xf32> to vector<2x32xf32>
    %186 = vector.extract_strided_slice %184 {offsets = [0, 32], sizes = [2, 32], strides = [1, 1]} : vector<2x128xf32> to vector<2x32xf32>
    %187 = vector.extract_strided_slice %184 {offsets = [0, 96], sizes = [2, 32], strides = [1, 1]} : vector<2x128xf32> to vector<2x32xf32>
    %188 = vector.extract_strided_slice %179 {offsets = [0, 64], sizes = [2, 32], strides = [1, 1]} : vector<2x128xf32> to vector<2x32xf32>
    %189 = math.tanh %188 : vector<2x32xf32>
    %190 = arith.mulf %186, %172 : vector<2x32xf32>
    %191 = arith.mulf %185, %189 : vector<2x32xf32>
    %192 = arith.addf %190, %191 : vector<2x32xf32>
    %193 = math.tanh %192 : vector<2x32xf32>
    %194 = arith.mulf %187, %193 : vector<2x32xf32>
    %c16 = arith.constant 16 : index
    %c0_37 = arith.constant 0 : index
    %195 = vector.load %arg3[%c16, %c0_37] : memref<32x32xf32, #tpu.memory_space<vmem>>, vector<2x32xf32>
    tpu.vector_store %arg3[%c16, %c0_37], %194 {strides = array<i32>} : memref<32x32xf32, #tpu.memory_space<vmem>>, vector<2x32xf32>,
    %196 = vector.extract_strided_slice %11 {offsets = [18, 0], sizes = [2, 128], strides = [1, 1]} : vector<32x128xf32> to vector<2x128xf32>
    %197 = arith.truncf %194 : vector<2x32xf32> to vector<2x32xbf16>
    %cst_38 = arith.constant dense<0.000000e+00> : vector<2x128xf32>
    %198 = tpu.matmul %197, %13, %cst_38 {dimension_numbers = #tpu.dot_dimension_numbers<[1], [0], [0], [1], [0, 0, 1, 1], [], []>} : vector<2x32xbf16>, vector<32x128xbf16>, vector<2x128xf32> -> vector<2x128xf32>
    %199 = arith.addf %196, %198 : vector<2x128xf32>
    %200 = arith.negf %199 : vector<2x128xf32>
    %201 = math.exp %200 : vector<2x128xf32>
    %cst_39 = arith.constant 1.000000e+00 : f32
    %202 = vector.broadcast %cst_39 : f32 to vector<2x128xf32>
    %203 = arith.addf %202, %201 : vector<2x128xf32>
    %204 = arith.divf %202, %203 : vector<2x128xf32>
    %205 = vector.extract_strided_slice %204 {offsets = [0, 0], sizes = [2, 32], strides = [1, 1]} : vector<2x128xf32> to vector<2x32xf32>
    %206 = vector.extract_strided_slice %204 {offsets = [0, 32], sizes = [2, 32], strides = [1, 1]} : vector<2x128xf32> to vector<2x32xf32>
    %207 = vector.extract_strided_slice %204 {offsets = [0, 96], sizes = [2, 32], strides = [1, 1]} : vector<2x128xf32> to vector<2x32xf32>
    %208 = vector.extract_strided_slice %199 {offsets = [0, 64], sizes = [2, 32], strides = [1, 1]} : vector<2x128xf32> to vector<2x32xf32>
    %209 = math.tanh %208 : vector<2x32xf32>
    %210 = arith.mulf %206, %192 : vector<2x32xf32>
    %211 = arith.mulf %205, %209 : vector<2x32xf32>
    %212 = arith.addf %210, %211 : vector<2x32xf32>
    %213 = math.tanh %212 : vector<2x32xf32>
    %214 = arith.mulf %207, %213 : vector<2x32xf32>
    %c18 = arith.constant 18 : index
    %c0_40 = arith.constant 0 : index
    %215 = vector.load %arg3[%c18, %c0_40] : memref<32x32xf32, #tpu.memory_space<vmem>>, vector<2x32xf32>
    tpu.vector_store %arg3[%c18, %c0_40], %214 {strides = array<i32>} : memref<32x32xf32, #tpu.memory_space<vmem>>, vector<2x32xf32>,
    %216 = vector.extract_strided_slice %11 {offsets = [20, 0], sizes = [2, 128], strides = [1, 1]} : vector<32x128xf32> to vector<2x128xf32>
    %217 = arith.truncf %214 : vector<2x32xf32> to vector<2x32xbf16>
    %cst_41 = arith.constant dense<0.000000e+00> : vector<2x128xf32>
    %218 = tpu.matmul %217, %13, %cst_41 {dimension_numbers = #tpu.dot_dimension_numbers<[1], [0], [0], [1], [0, 0, 1, 1], [], []>} : vector<2x32xbf16>, vector<32x128xbf16>, vector<2x128xf32> -> vector<2x128xf32>
    %219 = arith.addf %216, %218 : vector<2x128xf32>
    %220 = arith.negf %219 : vector<2x128xf32>
    %221 = math.exp %220 : vector<2x128xf32>
    %cst_42 = arith.constant 1.000000e+00 : f32
    %222 = vector.broadcast %cst_42 : f32 to vector<2x128xf32>
    %223 = arith.addf %222, %221 : vector<2x128xf32>
    %224 = arith.divf %222, %223 : vector<2x128xf32>
    %225 = vector.extract_strided_slice %224 {offsets = [0, 0], sizes = [2, 32], strides = [1, 1]} : vector<2x128xf32> to vector<2x32xf32>
    %226 = vector.extract_strided_slice %224 {offsets = [0, 32], sizes = [2, 32], strides = [1, 1]} : vector<2x128xf32> to vector<2x32xf32>
    %227 = vector.extract_strided_slice %224 {offsets = [0, 96], sizes = [2, 32], strides = [1, 1]} : vector<2x128xf32> to vector<2x32xf32>
    %228 = vector.extract_strided_slice %219 {offsets = [0, 64], sizes = [2, 32], strides = [1, 1]} : vector<2x128xf32> to vector<2x32xf32>
    %229 = math.tanh %228 : vector<2x32xf32>
    %230 = arith.mulf %226, %212 : vector<2x32xf32>
    %231 = arith.mulf %225, %229 : vector<2x32xf32>
    %232 = arith.addf %230, %231 : vector<2x32xf32>
    %233 = math.tanh %232 : vector<2x32xf32>
    %234 = arith.mulf %227, %233 : vector<2x32xf32>
    %c20 = arith.constant 20 : index
    %c0_43 = arith.constant 0 : index
    %235 = vector.load %arg3[%c20, %c0_43] : memref<32x32xf32, #tpu.memory_space<vmem>>, vector<2x32xf32>
    tpu.vector_store %arg3[%c20, %c0_43], %234 {strides = array<i32>} : memref<32x32xf32, #tpu.memory_space<vmem>>, vector<2x32xf32>,
    %236 = vector.extract_strided_slice %11 {offsets = [22, 0], sizes = [2, 128], strides = [1, 1]} : vector<32x128xf32> to vector<2x128xf32>
    %237 = arith.truncf %234 : vector<2x32xf32> to vector<2x32xbf16>
    %cst_44 = arith.constant dense<0.000000e+00> : vector<2x128xf32>
    %238 = tpu.matmul %237, %13, %cst_44 {dimension_numbers = #tpu.dot_dimension_numbers<[1], [0], [0], [1], [0, 0, 1, 1], [], []>} : vector<2x32xbf16>, vector<32x128xbf16>, vector<2x128xf32> -> vector<2x128xf32>
    %239 = arith.addf %236, %238 : vector<2x128xf32>
    %240 = arith.negf %239 : vector<2x128xf32>
    %241 = math.exp %240 : vector<2x128xf32>
    %cst_45 = arith.constant 1.000000e+00 : f32
    %242 = vector.broadcast %cst_45 : f32 to vector<2x128xf32>
    %243 = arith.addf %242, %241 : vector<2x128xf32>
    %244 = arith.divf %242, %243 : vector<2x128xf32>
    %245 = vector.extract_strided_slice %244 {offsets = [0, 0], sizes = [2, 32], strides = [1, 1]} : vector<2x128xf32> to vector<2x32xf32>
    %246 = vector.extract_strided_slice %244 {offsets = [0, 32], sizes = [2, 32], strides = [1, 1]} : vector<2x128xf32> to vector<2x32xf32>
    %247 = vector.extract_strided_slice %244 {offsets = [0, 96], sizes = [2, 32], strides = [1, 1]} : vector<2x128xf32> to vector<2x32xf32>
    %248 = vector.extract_strided_slice %239 {offsets = [0, 64], sizes = [2, 32], strides = [1, 1]} : vector<2x128xf32> to vector<2x32xf32>
    %249 = math.tanh %248 : vector<2x32xf32>
    %250 = arith.mulf %246, %232 : vector<2x32xf32>
    %251 = arith.mulf %245, %249 : vector<2x32xf32>
    %252 = arith.addf %250, %251 : vector<2x32xf32>
    %253 = math.tanh %252 : vector<2x32xf32>
    %254 = arith.mulf %247, %253 : vector<2x32xf32>
    %c22 = arith.constant 22 : index
    %c0_46 = arith.constant 0 : index
    %255 = vector.load %arg3[%c22, %c0_46] : memref<32x32xf32, #tpu.memory_space<vmem>>, vector<2x32xf32>
    tpu.vector_store %arg3[%c22, %c0_46], %254 {strides = array<i32>} : memref<32x32xf32, #tpu.memory_space<vmem>>, vector<2x32xf32>,
    %256 = vector.extract_strided_slice %11 {offsets = [24, 0], sizes = [2, 128], strides = [1, 1]} : vector<32x128xf32> to vector<2x128xf32>
    %257 = arith.truncf %254 : vector<2x32xf32> to vector<2x32xbf16>
    %cst_47 = arith.constant dense<0.000000e+00> : vector<2x128xf32>
    %258 = tpu.matmul %257, %13, %cst_47 {dimension_numbers = #tpu.dot_dimension_numbers<[1], [0], [0], [1], [0, 0, 1, 1], [], []>} : vector<2x32xbf16>, vector<32x128xbf16>, vector<2x128xf32> -> vector<2x128xf32>
    %259 = arith.addf %256, %258 : vector<2x128xf32>
    %260 = arith.negf %259 : vector<2x128xf32>
    %261 = math.exp %260 : vector<2x128xf32>
    %cst_48 = arith.constant 1.000000e+00 : f32
    %262 = vector.broadcast %cst_48 : f32 to vector<2x128xf32>
    %263 = arith.addf %262, %261 : vector<2x128xf32>
    %264 = arith.divf %262, %263 : vector<2x128xf32>
    %265 = vector.extract_strided_slice %264 {offsets = [0, 0], sizes = [2, 32], strides = [1, 1]} : vector<2x128xf32> to vector<2x32xf32>
    %266 = vector.extract_strided_slice %264 {offsets = [0, 32], sizes = [2, 32], strides = [1, 1]} : vector<2x128xf32> to vector<2x32xf32>
    %267 = vector.extract_strided_slice %264 {offsets = [0, 96], sizes = [2, 32], strides = [1, 1]} : vector<2x128xf32> to vector<2x32xf32>
    %268 = vector.extract_strided_slice %259 {offsets = [0, 64], sizes = [2, 32], strides = [1, 1]} : vector<2x128xf32> to vector<2x32xf32>
    %269 = math.tanh %268 : vector<2x32xf32>
    %270 = arith.mulf %266, %252 : vector<2x32xf32>
    %271 = arith.mulf %265, %269 : vector<2x32xf32>
    %272 = arith.addf %270, %271 : vector<2x32xf32>
    %273 = math.tanh %272 : vector<2x32xf32>
    %274 = arith.mulf %267, %273 : vector<2x32xf32>
    %c24 = arith.constant 24 : index
    %c0_49 = arith.constant 0 : index
    %275 = vector.load %arg3[%c24, %c0_49] : memref<32x32xf32, #tpu.memory_space<vmem>>, vector<2x32xf32>
    tpu.vector_store %arg3[%c24, %c0_49], %274 {strides = array<i32>} : memref<32x32xf32, #tpu.memory_space<vmem>>, vector<2x32xf32>,
    %276 = vector.extract_strided_slice %11 {offsets = [26, 0], sizes = [2, 128], strides = [1, 1]} : vector<32x128xf32> to vector<2x128xf32>
    %277 = arith.truncf %274 : vector<2x32xf32> to vector<2x32xbf16>
    %cst_50 = arith.constant dense<0.000000e+00> : vector<2x128xf32>
    %278 = tpu.matmul %277, %13, %cst_50 {dimension_numbers = #tpu.dot_dimension_numbers<[1], [0], [0], [1], [0, 0, 1, 1], [], []>} : vector<2x32xbf16>, vector<32x128xbf16>, vector<2x128xf32> -> vector<2x128xf32>
    %279 = arith.addf %276, %278 : vector<2x128xf32>
    %280 = arith.negf %279 : vector<2x128xf32>
    %281 = math.exp %280 : vector<2x128xf32>
    %cst_51 = arith.constant 1.000000e+00 : f32
    %282 = vector.broadcast %cst_51 : f32 to vector<2x128xf32>
    %283 = arith.addf %282, %281 : vector<2x128xf32>
    %284 = arith.divf %282, %283 : vector<2x128xf32>
    %285 = vector.extract_strided_slice %284 {offsets = [0, 0], sizes = [2, 32], strides = [1, 1]} : vector<2x128xf32> to vector<2x32xf32>
    %286 = vector.extract_strided_slice %284 {offsets = [0, 32], sizes = [2, 32], strides = [1, 1]} : vector<2x128xf32> to vector<2x32xf32>
    %287 = vector.extract_strided_slice %284 {offsets = [0, 96], sizes = [2, 32], strides = [1, 1]} : vector<2x128xf32> to vector<2x32xf32>
    %288 = vector.extract_strided_slice %279 {offsets = [0, 64], sizes = [2, 32], strides = [1, 1]} : vector<2x128xf32> to vector<2x32xf32>
    %289 = math.tanh %288 : vector<2x32xf32>
    %290 = arith.mulf %286, %272 : vector<2x32xf32>
    %291 = arith.mulf %285, %289 : vector<2x32xf32>
    %292 = arith.addf %290, %291 : vector<2x32xf32>
    %293 = math.tanh %292 : vector<2x32xf32>
    %294 = arith.mulf %287, %293 : vector<2x32xf32>
    %c26 = arith.constant 26 : index
    %c0_52 = arith.constant 0 : index
    %295 = vector.load %arg3[%c26, %c0_52] : memref<32x32xf32, #tpu.memory_space<vmem>>, vector<2x32xf32>
    tpu.vector_store %arg3[%c26, %c0_52], %294 {strides = array<i32>} : memref<32x32xf32, #tpu.memory_space<vmem>>, vector<2x32xf32>,
    %296 = vector.extract_strided_slice %11 {offsets = [28, 0], sizes = [2, 128], strides = [1, 1]} : vector<32x128xf32> to vector<2x128xf32>
    %297 = arith.truncf %294 : vector<2x32xf32> to vector<2x32xbf16>
    %cst_53 = arith.constant dense<0.000000e+00> : vector<2x128xf32>
    %298 = tpu.matmul %297, %13, %cst_53 {dimension_numbers = #tpu.dot_dimension_numbers<[1], [0], [0], [1], [0, 0, 1, 1], [], []>} : vector<2x32xbf16>, vector<32x128xbf16>, vector<2x128xf32> -> vector<2x128xf32>
    %299 = arith.addf %296, %298 : vector<2x128xf32>
    %300 = arith.negf %299 : vector<2x128xf32>
    %301 = math.exp %300 : vector<2x128xf32>
    %cst_54 = arith.constant 1.000000e+00 : f32
    %302 = vector.broadcast %cst_54 : f32 to vector<2x128xf32>
    %303 = arith.addf %302, %301 : vector<2x128xf32>
    %304 = arith.divf %302, %303 : vector<2x128xf32>
    %305 = vector.extract_strided_slice %304 {offsets = [0, 0], sizes = [2, 32], strides = [1, 1]} : vector<2x128xf32> to vector<2x32xf32>
    %306 = vector.extract_strided_slice %304 {offsets = [0, 32], sizes = [2, 32], strides = [1, 1]} : vector<2x128xf32> to vector<2x32xf32>
    %307 = vector.extract_strided_slice %304 {offsets = [0, 96], sizes = [2, 32], strides = [1, 1]} : vector<2x128xf32> to vector<2x32xf32>
    %308 = vector.extract_strided_slice %299 {offsets = [0, 64], sizes = [2, 32], strides = [1, 1]} : vector<2x128xf32> to vector<2x32xf32>
    %309 = math.tanh %308 : vector<2x32xf32>
    %310 = arith.mulf %306, %292 : vector<2x32xf32>
    %311 = arith.mulf %305, %309 : vector<2x32xf32>
    %312 = arith.addf %310, %311 : vector<2x32xf32>
    %313 = math.tanh %312 : vector<2x32xf32>
    %314 = arith.mulf %307, %313 : vector<2x32xf32>
    %c28 = arith.constant 28 : index
    %c0_55 = arith.constant 0 : index
    %315 = vector.load %arg3[%c28, %c0_55] : memref<32x32xf32, #tpu.memory_space<vmem>>, vector<2x32xf32>
    tpu.vector_store %arg3[%c28, %c0_55], %314 {strides = array<i32>} : memref<32x32xf32, #tpu.memory_space<vmem>>, vector<2x32xf32>,
    %316 = vector.extract_strided_slice %11 {offsets = [30, 0], sizes = [2, 128], strides = [1, 1]} : vector<32x128xf32> to vector<2x128xf32>
    %317 = arith.truncf %314 : vector<2x32xf32> to vector<2x32xbf16>
    %cst_56 = arith.constant dense<0.000000e+00> : vector<2x128xf32>
    %318 = tpu.matmul %317, %13, %cst_56 {dimension_numbers = #tpu.dot_dimension_numbers<[1], [0], [0], [1], [0, 0, 1, 1], [], []>} : vector<2x32xbf16>, vector<32x128xbf16>, vector<2x128xf32> -> vector<2x128xf32>
    %319 = arith.addf %316, %318 : vector<2x128xf32>
    %320 = arith.negf %319 : vector<2x128xf32>
    %321 = math.exp %320 : vector<2x128xf32>
    %cst_57 = arith.constant 1.000000e+00 : f32
    %322 = vector.broadcast %cst_57 : f32 to vector<2x128xf32>
    %323 = arith.addf %322, %321 : vector<2x128xf32>
    %324 = arith.divf %322, %323 : vector<2x128xf32>
    %325 = vector.extract_strided_slice %324 {offsets = [0, 0], sizes = [2, 32], strides = [1, 1]} : vector<2x128xf32> to vector<2x32xf32>
    %326 = vector.extract_strided_slice %324 {offsets = [0, 32], sizes = [2, 32], strides = [1, 1]} : vector<2x128xf32> to vector<2x32xf32>
    %327 = vector.extract_strided_slice %324 {offsets = [0, 96], sizes = [2, 32], strides = [1, 1]} : vector<2x128xf32> to vector<2x32xf32>
    %328 = vector.extract_strided_slice %319 {offsets = [0, 64], sizes = [2, 32], strides = [1, 1]} : vector<2x128xf32> to vector<2x32xf32>
    %329 = math.tanh %328 : vector<2x32xf32>
    %330 = arith.mulf %326, %312 : vector<2x32xf32>
    %331 = arith.mulf %325, %329 : vector<2x32xf32>
    %332 = arith.addf %330, %331 : vector<2x32xf32>
    %333 = math.tanh %332 : vector<2x32xf32>
    %334 = arith.mulf %327, %333 : vector<2x32xf32>
    %c30 = arith.constant 30 : index
    %c0_58 = arith.constant 0 : index
    %335 = vector.load %arg3[%c30, %c0_58] : memref<32x32xf32, #tpu.memory_space<vmem>>, vector<2x32xf32>
    tpu.vector_store %arg3[%c30, %c0_58], %334 {strides = array<i32>} : memref<32x32xf32, #tpu.memory_space<vmem>>, vector<2x32xf32>,
    %cst_59 = arith.constant 0.000000e+00 : f32
    %336 = vector.broadcast %cst_59 : f32 to vector<28x8xf32>
    %c0_60 = arith.constant 0 : index
    %c0_61 = arith.constant 0 : index
    %337 = vector.load %arg3[%c0_60, %c0_61] : memref<32x32xf32, #tpu.memory_space<vmem>>, vector<28x32xf32>
    %c80 = arith.constant 80 : index
    %c0_62 = arith.constant 0 : index
    %338 = vector.load %arg1[%c80, %c0_62] : memref<464x128xf32, #tpu.memory_space<vmem>>, vector<32x8xf32>
    %339 = arith.truncf %337 : vector<28x32xf32> to vector<28x32xbf16>
    %340 = arith.truncf %338 : vector<32x8xf32> to vector<32x8xbf16>
    %cst_63 = arith.constant dense<0.000000e+00> : vector<28x8xf32>
    %341 = tpu.matmul %339, %340, %cst_63 {dimension_numbers = #tpu.dot_dimension_numbers<[1], [0], [0], [1], [0, 0, 1, 1], [], []>} : vector<28x32xbf16>, vector<32x8xbf16>, vector<28x8xf32> -> vector<28x8xf32>
    %342 = arith.addf %336, %341 : vector<28x8xf32>
    %c2_64 = arith.constant 2 : index
    %c0_65 = arith.constant 0 : index
    %343 = vector.load %arg3[%c2_64, %c0_65] : memref<32x32xf32, #tpu.memory_space<vmem>>, vector<28x32xf32>
    %c112 = arith.constant 112 : index
    %c0_66 = arith.constant 0 : index
    %344 = vector.load %arg1[%c112, %c0_66] : memref<464x128xf32, #tpu.memory_space<vmem>>, vector<32x8xf32>
    %345 = arith.truncf %343 : vector<28x32xf32> to vector<28x32xbf16>
    %346 = arith.truncf %344 : vector<32x8xf32> to vector<32x8xbf16>
    %cst_67 = arith.constant dense<0.000000e+00> : vector<28x8xf32>
    %347 = tpu.matmul %345, %346, %cst_67 {dimension_numbers = #tpu.dot_dimension_numbers<[1], [0], [0], [1], [0, 0, 1, 1], [], []>} : vector<28x32xbf16>, vector<32x8xbf16>, vector<28x8xf32> -> vector<28x8xf32>
    %348 = arith.addf %342, %347 : vector<28x8xf32>
    %c4_68 = arith.constant 4 : index
    %c0_69 = arith.constant 0 : index
    %349 = vector.load %arg3[%c4_68, %c0_69] : memref<32x32xf32, #tpu.memory_space<vmem>>, vector<28x32xf32>
    %c144 = arith.constant 144 : index
    %c0_70 = arith.constant 0 : index
    %350 = vector.load %arg1[%c144, %c0_70] : memref<464x128xf32, #tpu.memory_space<vmem>>, vector<32x8xf32>
    %351 = arith.truncf %349 : vector<28x32xf32> to vector<28x32xbf16>
    %352 = arith.truncf %350 : vector<32x8xf32> to vector<32x8xbf16>
    %cst_71 = arith.constant dense<0.000000e+00> : vector<28x8xf32>
    %353 = tpu.matmul %351, %352, %cst_71 {dimension_numbers = #tpu.dot_dimension_numbers<[1], [0], [0], [1], [0, 0, 1, 1], [], []>} : vector<28x32xbf16>, vector<32x8xbf16>, vector<28x8xf32> -> vector<28x8xf32>
    %354 = arith.addf %348, %353 : vector<28x8xf32>
    %c176 = arith.constant 176 : index
    %c0_72 = arith.constant 0 : index
    %355 = vector.load %arg1[%c176, %c0_72] : memref<464x128xf32, #tpu.memory_space<vmem>>, vector<1x8xf32>
    %356 = vector.broadcast %355 : vector<1x8xf32> to vector<28x8xf32>
    %357 = arith.addf %354, %356 : vector<28x8xf32>
    %cst_73 = arith.constant 0.000000e+00 : f32
    %358 = vector.broadcast %cst_73 : f32 to vector<28x8xf32>
    %359 = arith.maximumf %357, %358 : vector<28x8xf32>
    %360 = vector.extract_strided_slice %334 {offsets = [0, 0], sizes = [1, 32], strides = [1, 1]} : vector<2x32xf32> to vector<1x32xf32>
    %361 = vector.extract_strided_slice %334 {offsets = [1, 0], sizes = [1, 32], strides = [1, 1]} : vector<2x32xf32> to vector<1x32xf32>
    %362 = tpu.concatenate %360, %361 in 1 : vector<1x32xf32>, vector<1x32xf32> -> vector<1x64xf32>
    %c184 = arith.constant 184 : index
    %c0_74 = arith.constant 0 : index
    %363 = vector.load %arg1[%c184, %c0_74] : memref<464x128xf32, #tpu.memory_space<vmem>>, vector<64x16xf32>
    %364 = arith.truncf %362 : vector<1x64xf32> to vector<1x64xbf16>
    %365 = arith.truncf %363 : vector<64x16xf32> to vector<64x16xbf16>
    %cst_75 = arith.constant dense<0.000000e+00> : vector<1x16xf32>
    %366 = tpu.matmul %364, %365, %cst_75 {dimension_numbers = #tpu.dot_dimension_numbers<[1], [0], [0], [1], [0, 0, 1, 1], [], []>} : vector<1x64xbf16>, vector<64x16xbf16>, vector<1x16xf32> -> vector<1x16xf32>
    %367 = vector.extract_strided_slice %366 {offsets = [0, 0], sizes = [1, 8], strides = [1, 1]} : vector<1x16xf32> to vector<1x8xf32>
    %368 = vector.extract_strided_slice %366 {offsets = [0, 8], sizes = [1, 8], strides = [1, 1]} : vector<1x16xf32> to vector<1x8xf32>
    %369 = tpu.concatenate %367, %368 in 0 : vector<1x8xf32>, vector<1x8xf32> -> vector<2x8xf32>
    %370 = arith.truncf %359 : vector<28x8xf32> to vector<28x8xbf16>
    %371 = arith.truncf %369 : vector<2x8xf32> to vector<2x8xbf16>
    %cst_76 = arith.constant dense<0.000000e+00> : vector<28x2xf32>
    %372 = tpu.matmul %370, %371, %cst_76 {dimension_numbers = #tpu.dot_dimension_numbers<[1], [1], [0], [0], [0, 0, 1, 0], [], []>} : vector<28x8xbf16>, vector<2x8xbf16>, vector<28x2xf32> -> vector<28x2xf32>
    %373 = tpu.iota {dimensions = array<i32: 0>} : vector<28x2xi32>
    %c2_i32 = arith.constant 2 : i32
    %c0_i32 = arith.constant 0 : i32
    %374 = arith.cmpi eq, %c2_i32, %c0_i32 : i32
    %c1_i32 = arith.constant 1 : i32
    %375 = arith.select %374, %c1_i32, %c2_i32 : i32
    %376 = vector.broadcast %375 : i32 to vector<28x2xi32>
    %377 = arith.remsi %373, %376 : vector<28x2xi32>
    %c0_i32_77 = arith.constant 0 : i32
    %378 = vector.broadcast %c0_i32_77 : i32 to vector<28x2xi32>
    %379 = arith.cmpi ne, %377, %378 : vector<28x2xi32>
    %c0_i32_78 = arith.constant 0 : i32
    %380 = vector.broadcast %c0_i32_78 : i32 to vector<28x2xi32>
    %381 = arith.cmpi slt, %377, %380 : vector<28x2xi32>
    %c0_i32_79 = arith.constant 0 : i32
    %382 = arith.cmpi slt, %375, %c0_i32_79 : i32
    %383 = vector.broadcast %382 : i1 to vector<28x2xi1>
    %384 = vector.broadcast %383 : vector<28x2xi1> to vector<28x2xi1>
    %385 = arith.xori %381, %384 : vector<28x2xi1>
    %386 = arith.andi %385, %379 : vector<28x2xi1>
    %387 = vector.broadcast %375 : i32 to vector<28x2xi32>
    %388 = arith.addi %377, %387 : vector<28x2xi32>
    %389 = arith.select %386, %388, %377 : vector<28x2xi1>, vector<28x2xi32>
    %390 = tpu.iota {dimensions = array<i32: 1>} : vector<28x2xi32>
    %391 = arith.cmpi eq, %389, %390 : vector<28x2xi32>
    %cst_80 = arith.constant 0.000000e+00 : f32
    %392 = vector.broadcast %cst_80 : f32 to vector<28x2xf32>
    %393 = arith.select %391, %372, %392 : vector<28x2xi1>, vector<28x2xf32>
    %cst_81 = arith.constant dense<0.000000e+00> : vector<28xf32>
    %394 = vector.multi_reduction <add>, %393, %cst_81 [1] : vector<28x2xf32> to vector<28xf32>
    %395 = vector.shape_cast %394 : vector<28xf32> to vector<28x1xf32>
    %396 = arith.negf %395 : vector<28x1xf32>
    %397 = math.exp %396 : vector<28x1xf32>
    %cst_82 = arith.constant 1.000000e+00 : f32
    %398 = vector.broadcast %cst_82 : f32 to vector<28x1xf32>
    %399 = arith.addf %398, %397 : vector<28x1xf32>
    %400 = arith.divf %398, %399 : vector<28x1xf32>
    %401 = vector.broadcast %400 : vector<28x1xf32> to vector<28x8xf32>
    %402 = arith.mulf %401, %359 : vector<28x8xf32>
    %403 = tpu.iota {dimensions = array<i32: 0>} : vector<2x28xi32>
    %404 = tpu.iota {dimensions = array<i32: 1>} : vector<2x28xi32>
    %c2_i32_83 = arith.constant 2 : i32
    %c0_i32_84 = arith.constant 0 : i32
    %405 = arith.cmpi eq, %c2_i32_83, %c0_i32_84 : i32
    %c1_i32_85 = arith.constant 1 : i32
    %406 = arith.select %405, %c1_i32_85, %c2_i32_83 : i32
    %407 = vector.broadcast %406 : i32 to vector<2x28xi32>
    %408 = arith.remsi %404, %407 : vector<2x28xi32>
    %c0_i32_86 = arith.constant 0 : i32
    %409 = vector.broadcast %c0_i32_86 : i32 to vector<2x28xi32>
    %410 = arith.cmpi ne, %408, %409 : vector<2x28xi32>
    %c0_i32_87 = arith.constant 0 : i32
    %411 = vector.broadcast %c0_i32_87 : i32 to vector<2x28xi32>
    %412 = arith.cmpi slt, %408, %411 : vector<2x28xi32>
    %c0_i32_88 = arith.constant 0 : i32
    %413 = arith.cmpi slt, %406, %c0_i32_88 : i32
    %414 = vector.broadcast %413 : i1 to vector<2x28xi1>
    %415 = vector.broadcast %414 : vector<2x28xi1> to vector<2x28xi1>
    %416 = arith.xori %412, %415 : vector<2x28xi1>
    %417 = arith.andi %416, %410 : vector<2x28xi1>
    %418 = vector.broadcast %406 : i32 to vector<2x28xi32>
    %419 = arith.addi %408, %418 : vector<2x28xi32>
    %420 = arith.select %417, %419, %408 : vector<2x28xi1>, vector<2x28xi32>
    %421 = arith.cmpi eq, %420, %403 : vector<2x28xi32>
    %cst_89 = arith.constant 1.000000e+00 : f32
    %cst_90 = arith.constant 0.000000e+00 : f32
    %422 = vector.broadcast %cst_89 : f32 to vector<2x28xf32>
    %423 = vector.broadcast %cst_90 : f32 to vector<2x28xf32>
    %424 = arith.select %421, %422, %423 : vector<2x28xi1>, vector<2x28xf32>
    %425 = arith.truncf %424 : vector<2x28xf32> to vector<2x28xbf16>
    %426 = arith.truncf %402 : vector<28x8xf32> to vector<28x8xbf16>
    %cst_91 = arith.constant dense<0.000000e+00> : vector<2x8xf32>
    %427 = tpu.matmul %425, %426, %cst_91 {dimension_numbers = #tpu.dot_dimension_numbers<[1], [0], [0], [1], [0, 0, 1, 1], [], []>} : vector<2x28xbf16>, vector<28x8xbf16>, vector<2x8xf32> -> vector<2x8xf32>
    %428 = vector.extract_strided_slice %427 {offsets = [0, 0], sizes = [1, 8], strides = [1, 1]} : vector<2x8xf32> to vector<1x8xf32>
    %429 = vector.extract_strided_slice %427 {offsets = [1, 0], sizes = [1, 8], strides = [1, 1]} : vector<2x8xf32> to vector<1x8xf32>
    %430 = tpu.concatenate %428, %429 in 1 : vector<1x8xf32>, vector<1x8xf32> -> vector<1x16xf32>
    %c248 = arith.constant 248 : index
    %c0_92 = arith.constant 0 : index
    %431 = vector.load %arg1[%c248, %c0_92] : memref<464x128xf32, #tpu.memory_space<vmem>>, vector<64x64xf32>
    %432 = arith.truncf %362 : vector<1x64xf32> to vector<1x64xbf16>
    %433 = arith.truncf %431 : vector<64x64xf32> to vector<64x64xbf16>
    %cst_93 = arith.constant dense<0.000000e+00> : vector<1x64xf32>
    %434 = tpu.matmul %432, %433, %cst_93 {dimension_numbers = #tpu.dot_dimension_numbers<[1], [0], [0], [1], [0, 0, 1, 1], [], []>} : vector<1x64xbf16>, vector<64x64xbf16>, vector<1x64xf32> -> vector<1x64xf32>
    %c312 = arith.constant 312 : index
    %c0_94 = arith.constant 0 : index
    %435 = vector.load %arg1[%c312, %c0_94] : memref<464x128xf32, #tpu.memory_space<vmem>>, vector<16x64xf32>
    %436 = arith.truncf %430 : vector<1x16xf32> to vector<1x16xbf16>
    %437 = arith.truncf %435 : vector<16x64xf32> to vector<16x64xbf16>
    %cst_95 = arith.constant dense<0.000000e+00> : vector<1x64xf32>
    %438 = tpu.matmul %436, %437, %cst_95 {dimension_numbers = #tpu.dot_dimension_numbers<[1], [0], [0], [1], [0, 0, 1, 1], [], []>} : vector<1x16xbf16>, vector<16x64xbf16>, vector<1x64xf32> -> vector<1x64xf32>
    %439 = arith.addf %434, %438 : vector<1x64xf32>
    %c328 = arith.constant 328 : index
    %c0_96 = arith.constant 0 : index
    %440 = vector.load %arg1[%c328, %c0_96] : memref<464x128xf32, #tpu.memory_space<vmem>>, vector<64x16xf32>
    %441 = arith.truncf %439 : vector<1x64xf32> to vector<1x64xbf16>
    %442 = arith.truncf %440 : vector<64x16xf32> to vector<64x16xbf16>
    %cst_97 = arith.constant dense<0.000000e+00> : vector<1x16xf32>
    %443 = tpu.matmul %441, %442, %cst_97 {dimension_numbers = #tpu.dot_dimension_numbers<[1], [0], [0], [1], [0, 0, 1, 1], [], []>} : vector<1x64xbf16>, vector<64x16xbf16>, vector<1x16xf32> -> vector<1x16xf32>
    %444 = vector.extract_strided_slice %443 {offsets = [0, 0], sizes = [1, 8], strides = [1, 1]} : vector<1x16xf32> to vector<1x8xf32>
    %445 = vector.extract_strided_slice %443 {offsets = [0, 8], sizes = [1, 8], strides = [1, 1]} : vector<1x16xf32> to vector<1x8xf32>
    %446 = tpu.concatenate %444, %445 in 0 : vector<1x8xf32>, vector<1x8xf32> -> vector<2x8xf32>
    %c392 = arith.constant 392 : index
    %c0_98 = arith.constant 0 : index
    %447 = vector.load %arg1[%c392, %c0_98] : memref<464x128xf32, #tpu.memory_space<vmem>>, vector<2x32xf32>
    %cst_99 = arith.constant dense<0.000000e+00> : vector<2x8xf32>
    %448 = tpu.matmul %447, %0, %cst_99 {dimension_numbers = #tpu.dot_dimension_numbers<[1], [0], [0], [1], [0, 0, 1, 1], [], []>} : vector<2x32xf32>, vector<32x8xf32>, vector<2x8xf32> -> vector<2x8xf32>
    %449 = arith.addf %446, %448 : vector<2x8xf32>
    %c400 = arith.constant 400 : index
    %c0_100 = arith.constant 0 : index
    %450 = vector.load %arg1[%c400, %c0_100] : memref<464x128xf32, #tpu.memory_space<vmem>>, vector<8x16xf32>
    %cst_101 = arith.constant dense<0.000000e+00> : vector<2x16xf32>
    %451 = tpu.matmul %449, %450, %cst_101 {dimension_numbers = #tpu.dot_dimension_numbers<[1], [0], [0], [1], [0, 0, 1, 1], [], []>} : vector<2x8xf32>, vector<8x16xf32>, vector<2x16xf32> -> vector<2x16xf32>
    %c408 = arith.constant 408 : index
    %c0_102 = arith.constant 0 : index
    %452 = vector.load %arg1[%c408, %c0_102] : memref<464x128xf32, #tpu.memory_space<vmem>>, vector<1x16xf32>
    %453 = vector.broadcast %452 : vector<1x16xf32> to vector<2x16xf32>
    %454 = arith.addf %451, %453 : vector<2x16xf32>
    %455 = math.tanh %454 : vector<2x16xf32>
    %c416 = arith.constant 416 : index
    %c0_103 = arith.constant 0 : index
    %456 = vector.load %arg1[%c416, %c0_103] : memref<464x128xf32, #tpu.memory_space<vmem>>, vector<16x16xf32>
    %cst_104 = arith.constant dense<0.000000e+00> : vector<2x16xf32>
    %457 = tpu.matmul %455, %456, %cst_104 {dimension_numbers = #tpu.dot_dimension_numbers<[1], [0], [0], [1], [0, 0, 1, 1], [], []>} : vector<2x16xf32>, vector<16x16xf32>, vector<2x16xf32> -> vector<2x16xf32>
    %c432 = arith.constant 432 : index
    %c0_105 = arith.constant 0 : index
    %458 = vector.load %arg1[%c432, %c0_105] : memref<464x128xf32, #tpu.memory_space<vmem>>, vector<1x16xf32>
    %459 = vector.broadcast %458 : vector<1x16xf32> to vector<2x16xf32>
    %460 = arith.addf %457, %459 : vector<2x16xf32>
    %461 = math.tanh %460 : vector<2x16xf32>
    %c440 = arith.constant 440 : index
    %c0_106 = arith.constant 0 : index
    %462 = vector.load %arg1[%c440, %c0_106] : memref<464x128xf32, #tpu.memory_space<vmem>>, vector<16x4xf32>
    %cst_107 = arith.constant dense<0.000000e+00> : vector<2x4xf32>
    %463 = tpu.matmul %461, %462, %cst_107 {dimension_numbers = #tpu.dot_dimension_numbers<[1], [0], [0], [1], [0, 0, 1, 1], [], []>} : vector<2x16xf32>, vector<16x4xf32>, vector<2x4xf32> -> vector<2x4xf32>
    %c456 = arith.constant 456 : index
    %c0_108 = arith.constant 0 : index
    %464 = vector.load %arg1[%c456, %c0_108] : memref<464x128xf32, #tpu.memory_space<vmem>>, vector<1x4xf32>
    %465 = vector.broadcast %464 : vector<1x4xf32> to vector<2x4xf32>
    %466 = arith.addf %463, %465 : vector<2x4xf32>
    %c0_109 = arith.constant 0 : index
    %c0_110 = arith.constant 0 : index
    %467 = vector.load %arg2[%c0_109, %c0_110] : memref<2x4xf32, #tpu.memory_space<vmem>>, vector<2x4xf32>
    tpu.vector_store %arg2[%c0_109, %c0_110], %466 {strides = array<i32>} : memref<2x4xf32, #tpu.memory_space<vmem>>, vector<2x4xf32>,
    return
  }
}

</mosaic_0001>

<bundles_post_ra>
// kernel: tpalstm_forward.1
= control target key start
LH: loop header
LB: loop body
LE: loop exit
PB: predicated region body
PF: predicated region fallthrough
CT: control target
= control target key end

     0   :  { %7 = vsyncpa [#allocation4], 0  ;;  %s2517_s0 = inlined_call_operand.vmem [shape: f32[32,8], index: 0, kind: input, shape index: {}]   ;;  %s2518_s1 = inlined_call_operand.hbm [shape: f32[464,128], index: 1, kind: input, shape index: {}]   ;;  %s2519_s2 = inlined_call_operand.hbm [shape: f32[2,4], index: 2, kind: output, shape index: {}]  }
   0x1   :  { %8 = vsyncpa [#allocation5], 0  ;;  %s15_s11 = sshll.u32 %s2518_s1, 4  ;;  %s2092_s12 = smov [#allocation3]   ;;  %s16_s11 = int_to_ptr.hbm [resolvable:$true] %s15_s11 }
   0x2   :  { %s17_s13 = sshll.u32 %s2092_s12, 4  ;;  %s2093_s14 = smov 128   ;;  %s18_s13 = int_to_ptr.vmem [resolvable:$true] %s17_s13 }
   0x3   :  { %s2094_s15 = smov 8  }
   0x4   :  { %23 = dma.hbm_to_vmem [thread:$0]  %s16_s11, 7424, %s18_s13, [#allocation4], %s2093_s14, %s2093_s14, %s2094_s15  }
   0x5   :  { %2088 = dma.done.wait [#allocation4], 7424  }
   0x6   :  { %2089 = vsyncadd [#allocation4], 4294959872  ;;  %v31_v0 = vld [vmem:[%s2517_s0 + $0x10] sm:$0xff]  ;;  %v32_v1 = vld [vmem:[%s2517_s0 + $0x18] sm:$0xff]  ;;  %vm41_vm0 = vcmask 261120   ;;  %v2095_v15 = vmov 0  }
   0x7   :  { %v29_v2 = vld [vmem:[%s2517_s0] sm:$0xff]  ;;  %v40_v3 = vpack.c.bf16 %v32_v1, %v31_v0  ;;  %v30_v4 = vld [vmem:[%s2517_s0 + $0x8] sm:$0xff]  ;;  %v33_v5 = vld [vmem:[#allocation3 + $0x30] sm:$0xff]  ;;  %vm80_vm1 = vcmask 1043456   ;;  %vm73_vm2 = vcmask 64512   ;;  %s2096_s23 = smov 64  }
   0x8   :  { %v34_v6 = vld [vmem:[#allocation3 + $0x38] sm:$0xff]  ;;  %v106_v8 = vld [vmem:[#allocation3 + $0x20] sm:$0xff]  ;;  %v103_v9 = vld [vmem:[#allocation3 + $0x8] sm:$0xff]  ;;  %v39_v10 = vpack.c.bf16 %v30_v4, %v29_v2  ;;  %s2097_s24 = smov 32   ;;  %s2098_s25 = smov 120  }
   0x9   :  { %v105_v7 = vld [vmem:[#allocation3 + $0x18] sm:$0xff]  ;;  %54 = vmatpush.bf16.msra.mxu0 %v40_v3  ;;  %v104_v12 = vld [vmem:[#allocation3 + $0x10] sm:$0xff]  ;;  %v37_v14 = vpack.c.bf16 %v34_v6, %v33_v5  ;;  %v67_v16 = vld [vmem:[#allocation3] sm:$0xff]  ;;  %s1807_s9 = sshll.u32 %s2519_s2, 4  ;;  %s1808_s9 = int_to_ptr.hbm [resolvable:$true] %s1807_s9 }
   0xa   :  { %v2132_v11 = vpack.c.bf16 %v106_v8, %v105_v7  ;;  %v2135_v13 = vpack.c.bf16 %v104_v12, %v103_v9  ;;  %v70_v17 = vpack.c.bf16 %v67_v16, %v67_v16  ;;  %v2156_v24 = vld [vmem:[#allocation3 + $0x28] ss:$0 sm:$0xff] }
   0xc   :  { %118 = vmatpush.bf16.msra.mxu2 %v2132_v11  ;;  %182 = vmatpush.bf16.msra.mxu3 %v2132_v11  ;;  %v82_v18 = vsel %vm80_vm1, %v70_v17, 0 }
   0xd   :  { %55 = vmatpush.bf16.msra.mxu0 %v39_v10  ;;  %91 = vmatpush.bf16.msra.mxu1 %v82_v18 }
  0x10   :  { %119 = vmatpush.bf16.msra.mxu2 %v2135_v13  ;;  %183 = vmatpush.bf16.msra.mxu3 %v2135_v13 }
  0x11   :  { %461 = vmatpush.bf16.msrb.mxu0 %v2132_v11  ;;  %395 = vmatpush.bf16.msrb.mxu1 %v2132_v11 }
  0x12   :  { %1817 = vmatmul.msk.bf16.vlgmr.msra.gmra.mxu0 %vm41_vm0, %v37_v14 }
  0x13   :  { %120 = vmatmul.bf16.vlgmr.msra.gmra.mxu2 %v2095_v15 }
  0x14   :  { %253 = vmatpush.bf16.msrb.mxu2 %v2132_v11  ;;  %324 = vmatpush.bf16.msrb.mxu3 %v2132_v11 }
  0x15   :  { %462 = vmatpush.bf16.msrb.mxu0 %v2135_v13  ;;  %396 = vmatpush.bf16.msrb.mxu1 %v2135_v13 }
  0x18   :  { %254 = vmatpush.bf16.msrb.mxu2 %v2135_v13  ;;  %325 = vmatpush.bf16.msrb.mxu3 %v2135_v13 }
  0x19   :  { %737 = vmatpush.bf16.msra.mxu0 %v2132_v11 }
  0x1c   :  { %531 = vmatpush.bf16.msra.mxu2 %v2132_v11 }
  0x1d   :  { %738 = vmatpush.bf16.msra.mxu0 %v2135_v13 }
  0x20   :  { %532 = vmatpush.bf16.msra.mxu2 %v2135_v13 }
  0x8f   :  { %v57_v19 = vpop.f32.mrf.mxu0 }
  0x96   :  { %v121_v21 = vpop.f32.mrf.mxu2 }
  0x97   :  { %v59_v20 = vpop.f32.mrf.mxu0 }
  0x98   :  { %v68_v22 = vpack.c.bf16 %v59_v20, %v57_v19 }
  0x9a   :  { %1819 = vmatmul.msk.bf16.vlgmr.msra.gmra.mxu1 %vm73_vm2, %v68_v22 }
  0x9b   :  { %671 = vmatpush.bf16.msra.mxu1 %v2132_v11 }
  0x9e   :  { %v123_v23 = vpop.f32.mrf.mxu2 }
  0x9f   :  { %672 = vmatpush.bf16.msra.mxu1 %v2135_v13 }
 0x117   :  { %v93_v25 = vpop.f32.mrf.mxu1 }
 0x118   :  { %v2159_v26 = vadd.f32 %v2156_v24, %v93_v25 }
 0x11a   :  { %v125_v27 = vadd.f32 %v121_v21, %v2159_v26 }
 0x11c   :  { %1887 = vtanh.f32 %v125_v27  ;;  %v1821_v29 = vmul.f32 -1.442695, %v125_v27 }
 0x11e   :  { %1889 = vpow2.f32 %v1821_v29 }
 0x122   :  { %v1888_v28 = vpop.eup %1887 }
 0x123   :  { %148 = vrot.lane.b32.xlu0 %v1888_v28, %s2096_s23 }
 0x124   :  { %v1890_v30 = vpop.eup %1889 }
 0x125   :  { %v129_v31 = vadd.f32 1.0, %v1890_v30 }
 0x127   :  { %1891 = vrcp.f32 %v129_v31  ;;  %v141_v37 = vand.u32 2147483648, %v129_v31  ;;  %vm135_vm4 = vweird.f32 %v129_v31  ;;  %v139_v38 = vand.u32 2147483647, %v129_v31 }
 0x129   :  { %v142_v40 = vor.u32 1.1754944e-38, %v141_v37  ;;  %vm140_vm6 = vcmp.eq.f32.partialorder %v139_v38, 8.507059e+37 }
 0x12d   :  { %v1892_v32 = vpop.eup %1891 }
 0x12e   :  { %v131_v33 = vmul.f32 %v1892_v32, %v129_v31  ;;  %vm136_vm3 = vweird.f32 %v1892_v32 }
 0x12f   :  { %vm137_vm5 = vmor %vm135_vm4, %vm136_vm3 }
 0x130   :  { %v132_v34 = vsub.f32 1.0, %v131_v33 }
 0x132   :  { %v133_v35 = vmul.f32 %v1892_v32, %v132_v34 }
 0x134   :  { %v134_v36 = vadd.f32 %v1892_v32, %v133_v35 }
 0x136   :  { %v138_v39 = vsel %vm137_vm5, %v1892_v32, %v134_v36 }
 0x137   :  { %v143_v42 = vsel %vm140_vm6, %v142_v40, %v138_v39 }
 0x138   :  { %v146_v44 = vmul.f32 0.0, %v143_v42 }
 0x195   :  { %v149_v41 = vpop.permute.xlu0 %148 }
 0x196   :  { %v151_v43 = vmul.f32 %v149_v41, %v143_v42 }
 0x198   :  { %153 = vrot.lane.b32.xlu0 %v151_v43, %s2097_s24 }
 0x20a   :  { %v154_v45 = vpop.permute.xlu0 %153 }
 0x20b   :  { %v156_v46 = vadd.f32 %v154_v45, %v146_v44 }
 0x20d   :  { %1893 = vtanh.f32 %v156_v46  ;;  %v214_v8 = vrot.slane %v156_v46, 6 }
 0x213   :  { %v1894_v47 = vpop.eup %1893 }
 0x214   :  { %159 = vrot.lane.b32.xlu1 %v1894_v47, %s2096_s23 }
 0x286   :  { %v160_v48 = vpop.permute.xlu1 %159 }
 0x287   :  { %v2165_v49 = vmul.f32 %v160_v48, %v143_v42 }
 0x289   :  { %v169_v50 = vpack.c.bf16 %v2165_v49, %v2165_v49 }
 0x28b   :  { %171 = vrot.lane.b32.xlu1 %v169_v50, %s2097_s24 }
 0x2fd   :  { %v172_v51 = vpop.permute.xlu1 %171 }
 0x2fe   :  { %1822 = vmatmul.msk.bf16.vlgmr.msra.gmra.mxu3 %vm41_vm0, %v172_v51 }
 0x2ff   :  { %601 = vmatpush.bf16.msra.mxu3 %v2132_v11 }
 0x303   :  { %602 = vmatpush.bf16.msra.mxu3 %v2135_v13 }
 0x381   :  { %v185_v52 = vpop.f32.mrf.mxu3 }
 0x382   :  { %v190_v53 = vrot.slane %v185_v52, 6 }
 0x384   :  { %v192_v54 = vadd.f32 %v190_v53, %v2159_v26 }
 0x386   :  { %1895 = vtanh.f32 %v192_v54  ;;  %v1823_v57 = vmul.f32 -1.442695, %v192_v54 }
 0x388   :  { %1897 = vpow2.f32 %v1823_v57 }
 0x389   :  { %v187_v55 = vpop.f32.mrf.mxu3 }
 0x38c   :  { %v1896_v56 = vpop.eup %1895 }
 0x38d   :  { %218 = vrot.lane.b32.xlu2 %v1896_v56, %s2096_s23 }
 0x38e   :  { %v1898_v58 = vpop.eup %1897 }
 0x38f   :  { %v196_v59 = vadd.f32 1.0, %v1898_v58 }
 0x391   :  { %1899 = vrcp.f32 %v196_v59  ;;  %v208_v1 = vand.u32 2147483648, %v196_v59  ;;  %vm202_vm8 = vweird.f32 %v196_v59  ;;  %v206_v2 = vand.u32 2147483647, %v196_v59 }
 0x393   :  { %v209_v4 = vor.u32 1.1754944e-38, %v208_v1  ;;  %vm207_vm10 = vcmp.eq.f32.partialorder %v206_v2, 8.507059e+37 }
 0x397   :  { %v1900_v60 = vpop.eup %1899 }
 0x398   :  { %v198_v61 = vmul.f32 %v1900_v60, %v196_v59  ;;  %vm203_vm7 = vweird.f32 %v1900_v60 }
 0x399   :  { %vm204_vm9 = vmor %vm202_vm8, %vm203_vm7 }
 0x39a   :  { %v199_v62 = vsub.f32 1.0, %v198_v61 }
 0x39c   :  { %v200_v63 = vmul.f32 %v1900_v60, %v199_v62 }
 0x39e   :  { %v201_v0 = vadd.f32 %v1900_v60, %v200_v63 }
 0x3a0   :  { %v205_v3 = vsel %vm204_vm9, %v1900_v60, %v201_v0 }
 0x3a1   :  { %v210_v6 = vsel %vm207_vm10, %v209_v4, %v205_v3 }
 0x3a2   :  { %v216_v9 = vmul.f32 %v214_v8, %v210_v6  ;;  %v35_v8 = vld [vmem:[#allocation3 + $0x40] sm:$0xff] }
 0x3e7   :  { %v219_v5 = vpop.permute.xlu2 %218 }
 0x3e8   :  { %v221_v7 = vmul.f32 %v219_v5, %v210_v6 }
 0x3ea   :  { %223 = vrot.lane.b32.xlu2 %v221_v7, %s2097_s24 }
 0x444   :  { %v224_v10 = vpop.permute.xlu2 %223 }
 0x445   :  { %v226_v12 = vadd.f32 %v224_v10, %v216_v9  ;;  %v36_v9 = vld [vmem:[#allocation3 + $0x48] sm:$0xff] }
 0x446   :  { %v38_v10 = vpack.c.bf16 %v36_v9, %v35_v8 }
 0x447   :  { %1901 = vtanh.f32 %v226_v12  ;;  %v285_v42 = vrot.slane %v226_v12, 6 }
 0x448   :  { %1818 = vmatmul.msk.bf16.gmra.mxu0 %vm41_vm0, %v38_v10 }
 0x44d   :  { %v1902_v14 = vpop.eup %1901 }
 0x44e   :  { %229 = vrot.lane.b32.xlu0 %v1902_v14, %s2096_s23 }
 0x4c0   :  { %v230_v15 = vpop.permute.xlu0 %229 }
 0x4c1   :  { %v2177_v16 = vmul.f32 %v230_v15, %v210_v6 }
 0x4c3   :  { %v239_v17 = vpack.c.bf16 %v2177_v16, %v2177_v16 }
 0x4c5   :  { %v241_v18 = vrot.slane %v239_v17, 1 }
 0x4c7   :  { %242 = vrot.lane.b32.xlu1 %v241_v18, %s2097_s24 }
 0x539   :  { %v243_v19 = vpop.permute.xlu1 %242 }
 0x53a   :  { %1824 = vmatmul.msk.bf16.vlgmr.msrb.gmra.mxu2 %vm41_vm0, %v243_v19 }
 0x53b   :  { %807 = vmatpush.bf16.msrb.mxu2 %v2132_v11 }
 0x53f   :  { %808 = vmatpush.bf16.msrb.mxu2 %v2135_v13 }
 0x5bd   :  { %v256_v20 = vpop.f32.mrf.mxu2 }
 0x5be   :  { %v261_v21 = vrot.slane %v256_v20, 4 }
 0x5c0   :  { %v263_v22 = vadd.f32 %v261_v21, %v2159_v26 }
 0x5c2   :  { %1903 = vtanh.f32 %v263_v22  ;;  %v1825_v27 = vmul.f32 -1.442695, %v263_v22 }
 0x5c4   :  { %1905 = vpow2.f32 %v1825_v27 }
 0x5c5   :  { %v258_v23 = vpop.f32.mrf.mxu2 }
 0x5c6   :  { %v62_v23 = vpop.f32.mrf.mxu0 }
 0x5c8   :  { %v1904_v25 = vpop.eup %1903 }
 0x5c9   :  { %289 = vrot.lane.b32.xlu2 %v1904_v25, %s2096_s23 }
 0x5ca   :  { %v1906_v28 = vpop.eup %1905 }
 0x5cb   :  { %v267_v29 = vadd.f32 1.0, %v1906_v28 }
 0x5cd   :  { %1907 = vrcp.f32 %v267_v29  ;;  %v279_v35 = vand.u32 2147483648, %v267_v29  ;;  %vm273_vm12 = vweird.f32 %v267_v29  ;;  %v277_v36 = vand.u32 2147483647, %v267_v29 }
 0x5ce   :  { %v64_v25 = vpop.f32.mrf.mxu0 }
 0x5cf   :  { %v280_v38 = vor.u32 1.1754944e-38, %v279_v35  ;;  %vm278_vm14 = vcmp.eq.f32.partialorder %v277_v36, 8.507059e+37  ;;  %v69_v27 = vpack.c.bf16 %v64_v25, %v62_v23 }
 0x5d1   :  { %1820 = vmatmul.msk.bf16.gmra.mxu1 %vm73_vm2, %v69_v27 }
 0x5d3   :  { %v1908_v30 = vpop.eup %1907 }
 0x5d4   :  { %v269_v31 = vmul.f32 %v1908_v30, %v267_v29  ;;  %vm274_vm11 = vweird.f32 %v1908_v30  ;;  %v95_v29 = vpop.f32.mrf.mxu1 }
 0x5d5   :  { %vm275_vm13 = vmor %vm273_vm12, %vm274_vm11 }
 0x5d6   :  { %v270_v32 = vsub.f32 1.0, %v269_v31 }
 0x5d8   :  { %v271_v33 = vmul.f32 %v1908_v30, %v270_v32  ;;  %v2216_v32 = vadd.f32 %v2156_v24, %v95_v29 }
 0x5da   :  { %v272_v34 = vadd.f32 %v1908_v30, %v271_v33 }
 0x5dc   :  { %v276_v37 = vsel %vm275_vm13, %v1908_v30, %v272_v34 }
 0x5dd   :  { %v281_v40 = vsel %vm278_vm14, %v280_v38, %v276_v37 }
 0x5de   :  { %v287_v43 = vmul.f32 %v285_v42, %v281_v40 }
 0x623   :  { %v290_v39 = vpop.permute.xlu2 %289 }
 0x624   :  { %v292_v41 = vmul.f32 %v290_v39, %v281_v40 }
 0x626   :  { %294 = vrot.lane.b32.xlu0 %v292_v41, %s2097_s24 }
 0x64e   :  { %v2211_v30 = vpop.f32.mrf.mxu1 }
 0x656   :  { %v2213_v31 = vpop.f32.mrf.mxu1 }
 0x698   :  { %v295_v44 = vpop.permute.xlu0 %294 }
 0x699   :  { %v297_v45 = vadd.f32 %v295_v44, %v287_v43 }
 0x69b   :  { %1909 = vtanh.f32 %v297_v45  ;;  %v356_v12 = vrot.slane %v297_v45, 6 }
 0x6a1   :  { %v1910_v46 = vpop.eup %1909 }
 0x6a2   :  { %300 = vrot.lane.b32.xlu1 %v1910_v46, %s2096_s23 }
 0x714   :  { %v301_v47 = vpop.permute.xlu1 %300 }
 0x715   :  { %v2189_v48 = vmul.f32 %v301_v47, %v281_v40 }
 0x717   :  { %v310_v50 = vpack.c.bf16 %v2189_v48, %v2189_v48 }
 0x719   :  { %v312_v51 = vrot.slane %v310_v50, 2 }
 0x71b   :  { %313 = vrot.lane.b32.xlu2 %v312_v51, %s2097_s24 }
 0x775   :  { %v314_v52 = vpop.permute.xlu2 %313 }
 0x776   :  { %1826 = vmatmul.msk.bf16.vlgmr.msrb.gmra.mxu3 %vm41_vm0, %v314_v52 }
 0x777   :  { %877 = vmatpush.bf16.msrb.mxu3 %v2132_v11 }
 0x77b   :  { %878 = vmatpush.bf16.msrb.mxu3 %v2135_v13 }
 0x7f9   :  { %v327_v53 = vpop.f32.mrf.mxu3 }
 0x7fa   :  { %v332_v54 = vrot.slane %v327_v53, 2 }
 0x7fc   :  { %v334_v55 = vadd.f32 %v332_v54, %v2159_v26 }
 0x7fe   :  { %1911 = vtanh.f32 %v334_v55  ;;  %v1827_v58 = vmul.f32 -1.442695, %v334_v55 }
 0x800   :  { %1913 = vpow2.f32 %v1827_v58 }
 0x801   :  { %v329_v56 = vpop.f32.mrf.mxu3 }
 0x804   :  { %v1912_v57 = vpop.eup %1911 }
 0x805   :  { %360 = vrot.lane.b32.xlu0 %v1912_v57, %s2096_s23 }
 0x806   :  { %v1914_v59 = vpop.eup %1913 }
 0x807   :  { %v338_v60 = vadd.f32 1.0, %v1914_v59 }
 0x809   :  { %1915 = vrcp.f32 %v338_v60  ;;  %v350_v2 = vand.u32 2147483648, %v338_v60  ;;  %vm344_vm1 = vweird.f32 %v338_v60  ;;  %v348_v3 = vand.u32 2147483647, %v338_v60 }
 0x80b   :  { %v351_v4 = vor.u32 1.1754944e-38, %v350_v2  ;;  %vm349_vm4 = vcmp.eq.f32.partialorder %v348_v3, 8.507059e+37 }
 0x80f   :  { %v1916_v61 = vpop.eup %1915 }
 0x810   :  { %v340_v62 = vmul.f32 %v1916_v61, %v338_v60  ;;  %vm345_vm15 = vweird.f32 %v1916_v61 }
 0x811   :  { %vm346_vm3 = vmor %vm344_vm1, %vm345_vm15 }
 0x812   :  { %v341_v63 = vsub.f32 1.0, %v340_v62 }
 0x814   :  { %v342_v0 = vmul.f32 %v1916_v61, %v341_v63 }
 0x816   :  { %v343_v1 = vadd.f32 %v1916_v61, %v342_v0 }
 0x818   :  { %v347_v26 = vsel %vm346_vm3, %v1916_v61, %v343_v1 }
 0x819   :  { %v352_v6 = vsel %vm349_vm4, %v351_v4, %v347_v26 }
 0x81a   :  { %v358_v14 = vmul.f32 %v356_v12, %v352_v6 }
 0x877   :  { %v361_v5 = vpop.permute.xlu0 %360 }
 0x878   :  { %v363_v7 = vmul.f32 %v361_v5, %v352_v6 }
 0x87a   :  { %365 = vrot.lane.b32.xlu1 %v363_v7, %s2097_s24 }
 0x8ec   :  { %v366_v15 = vpop.permute.xlu1 %365 }
 0x8ed   :  { %v368_v17 = vadd.f32 %v366_v15, %v358_v14 }
 0x8ef   :  { %1917 = vtanh.f32 %v368_v17  ;;  %v424_v54 = vrot.slane %v368_v17, 6 }
 0x8f5   :  { %v1918_v18 = vpop.eup %1917 }
 0x8f6   :  { %371 = vrot.lane.b32.xlu2 %v1918_v18, %s2096_s23 }
 0x950   :  { %v372_v19 = vpop.permute.xlu2 %371 }
 0x951   :  { %v2202_v20 = vmul.f32 %v372_v19, %v352_v6 }
 0x953   :  { %v381_v21 = vpack.c.bf16 %v2202_v20, %v2202_v20 }
 0x955   :  { %v383_v22 = vrot.slane %v381_v21, 3 }
 0x957   :  { %384 = vrot.lane.b32.xlu0 %v383_v22, %s2097_s24 }
 0x9c9   :  { %v385_v28 = vpop.permute.xlu0 %384 }
 0x9ca   :  { %1828 = vmatmul.msk.bf16.vlgmr.msrb.gmra.mxu1 %vm41_vm0, %v385_v28 }
 0x9cb   :  { %947 = vmatpush.bf16.msrb.mxu1 %v2132_v11 }
 0x9cf   :  { %948 = vmatpush.bf16.msrb.mxu1 %v2135_v13 }
 0xa47   :  { %v398_v33 = vpop.f32.mrf.mxu1 }
 0xa48   :  { %v402_v34 = vadd.f32 %v398_v33, %v2216_v32 }
 0xa4a   :  { %1919 = vtanh.f32 %v402_v34  ;;  %v1829_v37 = vmul.f32 -1.442695, %v402_v34 }
 0xa4c   :  { %1921 = vpow2.f32 %v1829_v37 }
 0xa4f   :  { %v400_v35 = vpop.f32.mrf.mxu1 }
 0xa50   :  { %v1920_v36 = vpop.eup %1919 }
 0xa51   :  { %428 = vrot.lane.b32.xlu1 %v1920_v36, %s2096_s23 }
 0xa52   :  { %v1922_v38 = vpop.eup %1921 }
 0xa53   :  { %v406_v39 = vadd.f32 1.0, %v1922_v38 }
 0xa55   :  { %1923 = vrcp.f32 %v406_v39  ;;  %v418_v45 = vand.u32 2147483648, %v406_v39  ;;  %vm412_vm6 = vweird.f32 %v406_v39  ;;  %v416_v46 = vand.u32 2147483647, %v406_v39 }
 0xa57   :  { %v419_v50 = vor.u32 1.1754944e-38, %v418_v45  ;;  %vm417_vm8 = vcmp.eq.f32.partialorder %v416_v46, 8.507059e+37 }
 0xa5b   :  { %v1924_v40 = vpop.eup %1923 }
 0xa5c   :  { %v408_v41 = vmul.f32 %v1924_v40, %v406_v39  ;;  %vm413_vm5 = vweird.f32 %v1924_v40 }
 0xa5d   :  { %vm414_vm7 = vmor %vm412_vm6, %vm413_vm5 }
 0xa5e   :  { %v409_v42 = vsub.f32 1.0, %v408_v41 }
 0xa60   :  { %v410_v43 = vmul.f32 %v1924_v40, %v409_v42 }
 0xa62   :  { %v411_v44 = vadd.f32 %v1924_v40, %v410_v43 }
 0xa64   :  { %v415_v47 = vsel %vm414_vm7, %v1924_v40, %v411_v44 }
 0xa65   :  { %v420_v52 = vsel %vm417_vm8, %v419_v50, %v415_v47 }
 0xa66   :  { %v426_v55 = vmul.f32 %v424_v54, %v420_v52 }
 0xac3   :  { %v429_v51 = vpop.permute.xlu1 %428 }
 0xac4   :  { %v431_v53 = vmul.f32 %v429_v51, %v420_v52 }
 0xac6   :  { %433 = vrot.lane.b32.xlu2 %v431_v53, %s2097_s24 }
 0xb20   :  { %v434_v56 = vpop.permute.xlu2 %433 }
 0xb21   :  { %v436_v57 = vadd.f32 %v434_v56, %v426_v55 }
 0xb23   :  { %1925 = vtanh.f32 %v436_v57  ;;  %v493_v22 = vrot.slane %v436_v57, 6 }
 0xb29   :  { %v1926_v58 = vpop.eup %1925 }
 0xb2a   :  { %439 = vrot.lane.b32.xlu0 %v1926_v58, %s2096_s23 }
 0xb9c   :  { %v440_v59 = vpop.permute.xlu0 %439 }
 0xb9d   :  { %v2222_v60 = vmul.f32 %v440_v59, %v420_v52 }
 0xb9f   :  { %v448_v61 = vpack.c.bf16 %v2222_v60, %v2222_v60 }
 0xba1   :  { %450 = vrot.lane.b32.xlu1 %v448_v61, %s2097_s24 }
 0xc13   :  { %v451_v62 = vpop.permute.xlu1 %450 }
 0xc14   :  { %1830 = vmatmul.msk.bf16.vlgmr.msrb.gmra.mxu0 %vm41_vm0, %v451_v62 }
 0xc15   :  { %1013 = vmatpush.bf16.msrb.mxu0 %v2132_v11 }
 0xc19   :  { %1014 = vmatpush.bf16.msrb.mxu0 %v2135_v13 }
 0xc91   :  { %v464_v63 = vpop.f32.mrf.mxu0 }
 0xc92   :  { %v469_v0 = vrot.slane %v464_v63, 6 }
 0xc94   :  { %v471_v1 = vadd.f32 %v469_v0, %v2216_v32 }
 0xc96   :  { %1927 = vtanh.f32 %v471_v1  ;;  %v1831_v26 = vmul.f32 -1.442695, %v471_v1 }
 0xc98   :  { %1929 = vpow2.f32 %v1831_v26 }
 0xc99   :  { %v466_v2 = vpop.f32.mrf.mxu0 }
 0xc9c   :  { %v1928_v3 = vpop.eup %1927 }
 0xc9d   :  { %497 = vrot.lane.b32.xlu2 %v1928_v3, %s2096_s23 }
 0xc9e   :  { %v1930_v4 = vpop.eup %1929 }
 0xc9f   :  { %v475_v5 = vadd.f32 1.0, %v1930_v4 }
 0xca1   :  { %1931 = vrcp.f32 %v475_v5  ;;  %v487_v12 = vand.u32 2147483648, %v475_v5  ;;  %vm481_vm10 = vweird.f32 %v475_v5  ;;  %v485_v14 = vand.u32 2147483647, %v475_v5 }
 0xca3   :  { %v488_v17 = vor.u32 1.1754944e-38, %v487_v12  ;;  %vm486_vm12 = vcmp.eq.f32.partialorder %v485_v14, 8.507059e+37 }
 0xca7   :  { %v1932_v6 = vpop.eup %1931 }
 0xca8   :  { %v477_v7 = vmul.f32 %v1932_v6, %v475_v5  ;;  %vm482_vm9 = vweird.f32 %v1932_v6 }
 0xca9   :  { %vm483_vm11 = vmor %vm481_vm10, %vm482_vm9 }
 0xcaa   :  { %v478_v8 = vsub.f32 1.0, %v477_v7 }
 0xcac   :  { %v479_v9 = vmul.f32 %v1932_v6, %v478_v8 }
 0xcae   :  { %v480_v10 = vadd.f32 %v1932_v6, %v479_v9 }
 0xcb0   :  { %v484_v15 = vsel %vm483_vm11, %v1932_v6, %v480_v10 }
 0xcb1   :  { %v489_v19 = vsel %vm486_vm12, %v488_v17, %v484_v15 }
 0xcb2   :  { %v495_v23 = vmul.f32 %v493_v22, %v489_v19 }
 0xcf7   :  { %v498_v18 = vpop.permute.xlu2 %497 }
 0xcf8   :  { %v500_v21 = vmul.f32 %v498_v18, %v489_v19 }
 0xcfa   :  { %502 = vrot.lane.b32.xlu0 %v500_v21, %s2097_s24 }
 0xd6c   :  { %v503_v25 = vpop.permute.xlu0 %502 }
 0xd6d   :  { %v505_v27 = vadd.f32 %v503_v25, %v495_v23 }
 0xd6f   :  { %1933 = vtanh.f32 %v505_v27  ;;  %v563_v59 = vrot.slane %v505_v27, 6 }
 0xd75   :  { %v1934_v28 = vpop.eup %1933 }
 0xd76   :  { %508 = vrot.lane.b32.xlu1 %v1934_v28, %s2096_s23 }
 0xde8   :  { %v509_v29 = vpop.permute.xlu1 %508 }
 0xde9   :  { %v2234_v33 = vmul.f32 %v509_v29, %v489_v19 }
 0xdeb   :  { %v517_v34 = vpack.c.bf16 %v2234_v33, %v2234_v33 }
 0xded   :  { %v519_v35 = vrot.slane %v517_v34, 1 }
 0xdef   :  { %520 = vrot.lane.b32.xlu2 %v519_v35, %s2097_s24 }
 0xe49   :  { %v521_v36 = vpop.permute.xlu2 %520 }
 0xe4a   :  { %1832 = vmatmul.msk.bf16.vlgmr.msra.gmra.mxu2 %vm41_vm0, %v521_v36 }
 0xe4b   :  { %1083 = vmatpush.bf16.msra.mxu2 %v2132_v11 }
 0xe4f   :  { %1084 = vmatpush.bf16.msra.mxu2 %v2135_v13 }
 0xecd   :  { %v534_v37 = vpop.f32.mrf.mxu2 }
 0xece   :  { %v539_v38 = vrot.slane %v534_v37, 4 }
 0xed0   :  { %v541_v39 = vadd.f32 %v539_v38, %v2216_v32 }
 0xed2   :  { %1935 = vtanh.f32 %v541_v39  ;;  %v1833_v42 = vmul.f32 -1.442695, %v541_v39 }
 0xed4   :  { %1937 = vpow2.f32 %v1833_v42  ;;  %v2266_v42 = vadd.f32 %v2156_v24, %v2211_v30 }
 0xed5   :  { %v536_v40 = vpop.f32.mrf.mxu2 }
 0xed8   :  { %v1936_v41 = vpop.eup %1935 }
 0xed9   :  { %567 = vrot.lane.b32.xlu0 %v1936_v41, %s2096_s23 }
 0xeda   :  { %v1938_v43 = vpop.eup %1937 }
 0xedb   :  { %v545_v44 = vadd.f32 1.0, %v1938_v43 }
 0xedd   :  { %1939 = vrcp.f32 %v545_v44  ;;  %v557_v52 = vand.u32 2147483648, %v545_v44  ;;  %vm551_vm14 = vweird.f32 %v545_v44  ;;  %v555_v53 = vand.u32 2147483647, %v545_v44 }
 0xedf   :  { %v558_v55 = vor.u32 1.1754944e-38, %v557_v52  ;;  %vm556_vm1 = vcmp.eq.f32.partialorder %v555_v53, 8.507059e+37 }
 0xee3   :  { %v1940_v45 = vpop.eup %1939 }
 0xee4   :  { %v547_v46 = vmul.f32 %v1940_v45, %v545_v44  ;;  %vm552_vm13 = vweird.f32 %v1940_v45 }
 0xee5   :  { %vm553_vm15 = vmor %vm551_vm14, %vm552_vm13 }
 0xee6   :  { %v548_v47 = vsub.f32 1.0, %v547_v46 }
 0xee8   :  { %v549_v50 = vmul.f32 %v1940_v45, %v548_v47 }
 0xeea   :  { %v550_v51 = vadd.f32 %v1940_v45, %v549_v50 }
 0xeec   :  { %v554_v54 = vsel %vm553_vm15, %v1940_v45, %v550_v51 }
 0xeed   :  { %v559_v57 = vsel %vm556_vm1, %v558_v55, %v554_v54 }
 0xeee   :  { %v565_v61 = vmul.f32 %v563_v59, %v559_v57 }
 0xf4b   :  { %v568_v56 = vpop.permute.xlu0 %567 }
 0xf4c   :  { %v570_v58 = vmul.f32 %v568_v56, %v559_v57 }
 0xf4e   :  { %572 = vrot.lane.b32.xlu1 %v570_v58, %s2097_s24 }
 0xfc0   :  { %v573_v62 = vpop.permute.xlu1 %572 }
 0xfc1   :  { %v575_v63 = vadd.f32 %v573_v62, %v565_v61 }
 0xfc3   :  { %1941 = vtanh.f32 %v575_v63  ;;  %v633_v28 = vrot.slane %v575_v63, 6 }
 0xfc9   :  { %v1942_v0 = vpop.eup %1941 }
 0xfca   :  { %578 = vrot.lane.b32.xlu2 %v1942_v0, %s2096_s23 }
0x1024   :  { %v579_v1 = vpop.permute.xlu2 %578 }
0x1025   :  { %v2246_v2 = vmul.f32 %v579_v1, %v559_v57 }
0x1027   :  { %v587_v3 = vpack.c.bf16 %v2246_v2, %v2246_v2 }
0x1029   :  { %v589_v26 = vrot.slane %v587_v3, 2 }
0x102b   :  { %590 = vrot.lane.b32.xlu0 %v589_v26, %s2097_s24 }
0x109d   :  { %v591_v4 = vpop.permute.xlu0 %590 }
0x109e   :  { %1834 = vmatmul.msk.bf16.vlgmr.msra.gmra.mxu3 %vm41_vm0, %v591_v4 }
0x109f   :  { %1153 = vmatpush.bf16.msra.mxu3 %v2132_v11 }
0x10a3   :  { %1154 = vmatpush.bf16.msra.mxu3 %v2135_v13 }
0x1121   :  { %v604_v5 = vpop.f32.mrf.mxu3 }
0x1122   :  { %v609_v6 = vrot.slane %v604_v5, 2 }
0x1124   :  { %v611_v7 = vadd.f32 %v609_v6, %v2216_v32 }
0x1126   :  { %1943 = vtanh.f32 %v611_v7  ;;  %v1835_v10 = vmul.f32 -1.442695, %v611_v7 }
0x1128   :  { %1945 = vpow2.f32 %v1835_v10 }
0x1129   :  { %v606_v8 = vpop.f32.mrf.mxu3 }
0x112c   :  { %v1944_v9 = vpop.eup %1943 }
0x112d   :  { %637 = vrot.lane.b32.xlu1 %v1944_v9, %s2096_s23 }
0x112e   :  { %v1946_v12 = vpop.eup %1945 }
0x112f   :  { %v615_v14 = vadd.f32 1.0, %v1946_v12 }
0x1131   :  { %1947 = vrcp.f32 %v615_v14  ;;  %v627_v13 = vand.u32 2147483648, %v615_v14  ;;  %vm621_vm4 = vweird.f32 %v615_v14  ;;  %v625_v21 = vand.u32 2147483647, %v615_v14 }
0x1133   :  { %v628_v22 = vor.u32 1.1754944e-38, %v627_v13  ;;  %vm626_vm6 = vcmp.eq.f32.partialorder %v625_v21, 8.507059e+37 }
0x1137   :  { %v1948_v15 = vpop.eup %1947 }
0x1138   :  { %v617_v17 = vmul.f32 %v1948_v15, %v615_v14  ;;  %vm622_vm3 = vweird.f32 %v1948_v15 }
0x1139   :  { %vm623_vm5 = vmor %vm621_vm4, %vm622_vm3 }
0x113a   :  { %v618_v18 = vsub.f32 1.0, %v617_v17 }
0x113c   :  { %v619_v11 = vmul.f32 %v1948_v15, %v618_v18 }
0x113e   :  { %v620_v19 = vadd.f32 %v1948_v15, %v619_v11 }
0x1140   :  { %v624_v32 = vsel %vm623_vm5, %v1948_v15, %v620_v19 }
0x1141   :  { %v629_v25 = vsel %vm626_vm6, %v628_v22, %v624_v32 }
0x1142   :  { %v635_v29 = vmul.f32 %v633_v28, %v629_v25 }
0x119f   :  { %v638_v23 = vpop.permute.xlu1 %637 }
0x11a0   :  { %v640_v27 = vmul.f32 %v638_v23, %v629_v25 }
0x11a2   :  { %642 = vrot.lane.b32.xlu2 %v640_v27, %s2097_s24 }
0x11fc   :  { %v643_v34 = vpop.permute.xlu2 %642 }
0x11fd   :  { %v645_v35 = vadd.f32 %v643_v34, %v635_v29 }
0x11ff   :  { %1949 = vtanh.f32 %v645_v35  ;;  %v700_v63 = vrot.slane %v645_v35, 6 }
0x1205   :  { %v1950_v36 = vpop.eup %1949 }
0x1206   :  { %648 = vrot.lane.b32.xlu0 %v1950_v36, %s2096_s23 }
0x1278   :  { %v649_v37 = vpop.permute.xlu0 %648 }
0x1279   :  { %v2258_v38 = vmul.f32 %v649_v37, %v629_v25 }
0x127b   :  { %v657_v39 = vpack.c.bf16 %v2258_v38, %v2258_v38 }
0x127d   :  { %v659_v40 = vrot.slane %v657_v39, 3 }
0x127f   :  { %660 = vrot.lane.b32.xlu1 %v659_v40, %s2097_s24 }
0x12f1   :  { %v661_v41 = vpop.permute.xlu1 %660 }
0x12f2   :  { %1836 = vmatmul.msk.bf16.vlgmr.msra.gmra.mxu1 %vm41_vm0, %v661_v41 }
0x136f   :  { %v674_v43 = vpop.f32.mrf.mxu1 }
0x1370   :  { %v678_v44 = vadd.f32 %v674_v43, %v2266_v42 }
0x1372   :  { %1951 = vtanh.f32 %v678_v44  ;;  %v1837_v47 = vmul.f32 -1.442695, %v678_v44 }
0x1374   :  { %1953 = vpow2.f32 %v1837_v47 }
0x1377   :  { %v676_v45 = vpop.f32.mrf.mxu1 }
0x1378   :  { %v1952_v46 = vpop.eup %1951 }
0x1379   :  { %704 = vrot.lane.b32.xlu2 %v1952_v46, %s2096_s23 }
0x137a   :  { %v1954_v50 = vpop.eup %1953 }
0x137b   :  { %v682_v51 = vadd.f32 1.0, %v1954_v50 }
0x137d   :  { %1955 = vrcp.f32 %v682_v51  ;;  %v694_v24 = vand.u32 2147483648, %v682_v51  ;;  %vm688_vm8 = vweird.f32 %v682_v51  ;;  %v692_v30 = vand.u32 2147483647, %v682_v51 }
0x137f   :  { %v695_v58 = vor.u32 1.1754944e-38, %v694_v24  ;;  %vm693_vm10 = vcmp.eq.f32.partialorder %v692_v30, 8.507059e+37 }
0x1383   :  { %v1956_v52 = vpop.eup %1955 }
0x1384   :  { %v684_v53 = vmul.f32 %v1956_v52, %v682_v51  ;;  %vm689_vm7 = vweird.f32 %v1956_v52 }
0x1385   :  { %vm690_vm9 = vmor %vm688_vm8, %vm689_vm7 }
0x1386   :  { %v685_v54 = vsub.f32 1.0, %v684_v53 }
0x1388   :  { %v686_v55 = vmul.f32 %v1956_v52, %v685_v54 }
0x138a   :  { %v687_v56 = vadd.f32 %v1956_v52, %v686_v55 }
0x138c   :  { %v691_v57 = vsel %vm690_vm9, %v1956_v52, %v687_v56 }
0x138d   :  { %v696_v61 = vsel %vm693_vm10, %v695_v58, %v691_v57 }
0x138e   :  { %v702_v0 = vmul.f32 %v700_v63, %v696_v61 }
0x13d3   :  { %v705_v59 = vpop.permute.xlu2 %704 }
0x13d4   :  { %v707_v62 = vmul.f32 %v705_v59, %v696_v61 }
0x13d6   :  { %709 = vrot.lane.b32.xlu0 %v707_v62, %s2097_s24 }
0x1448   :  { %v710_v1 = vpop.permute.xlu0 %709 }
0x1449   :  { %v712_v3 = vadd.f32 %v710_v1, %v702_v0 }
0x144b   :  { %1957 = vtanh.f32 %v712_v3  ;;  %v769_v35 = vrot.slane %v712_v3, 6 }
0x1451   :  { %v1958_v26 = vpop.eup %1957 }
0x1452   :  { %715 = vrot.lane.b32.xlu1 %v1958_v26, %s2096_s23 }
0x14c4   :  { %v716_v4 = vpop.permute.xlu1 %715 }
0x14c5   :  { %v2272_v5 = vmul.f32 %v716_v4, %v696_v61 }
0x14c7   :  { %v724_v6 = vpack.c.bf16 %v2272_v5, %v2272_v5 }
0x14c9   :  { %726 = vrot.lane.b32.xlu2 %v724_v6, %s2097_s24 }
0x1523   :  { %v727_v7 = vpop.permute.xlu2 %726 }
0x1524   :  { %1838 = vmatmul.msk.bf16.vlgmr.msra.gmra.mxu0 %vm41_vm0, %v727_v7 }
0x15a1   :  { %v740_v8 = vpop.f32.mrf.mxu0 }
0x15a2   :  { %v745_v9 = vrot.slane %v740_v8, 6 }
0x15a4   :  { %v747_v10 = vadd.f32 %v745_v9, %v2266_v42 }
0x15a6   :  { %1959 = vtanh.f32 %v747_v10  ;;  %v1839_v15 = vmul.f32 -1.442695, %v747_v10 }
0x15a8   :  { %1961 = vpow2.f32 %v1839_v15 }
0x15a9   :  { %v742_v12 = vpop.f32.mrf.mxu0 }
0x15ac   :  { %v1960_v14 = vpop.eup %1959 }
0x15ad   :  { %773 = vrot.lane.b32.xlu0 %v1960_v14, %s2096_s23 }
0x15ae   :  { %v1962_v17 = vpop.eup %1961 }
0x15af   :  { %v751_v18 = vadd.f32 1.0, %v1962_v17 }
0x15b1   :  { %1963 = vrcp.f32 %v751_v18  ;;  %v763_v22 = vand.u32 2147483648, %v751_v18  ;;  %vm757_vm12 = vweird.f32 %v751_v18  ;;  %v761_v23 = vand.u32 2147483647, %v751_v18 }
0x15b3   :  { %v764_v27 = vor.u32 1.1754944e-38, %v763_v22  ;;  %vm762_vm14 = vcmp.eq.f32.partialorder %v761_v23, 8.507059e+37 }
0x15b7   :  { %v1964_v11 = vpop.eup %1963 }
0x15b8   :  { %v753_v19 = vmul.f32 %v1964_v11, %v751_v18  ;;  %vm758_vm11 = vweird.f32 %v1964_v11 }
0x15b9   :  { %vm759_vm13 = vmor %vm757_vm12, %vm758_vm11 }
0x15ba   :  { %v754_v13 = vsub.f32 1.0, %v753_v19 }
0x15bc   :  { %v755_v21 = vmul.f32 %v1964_v11, %v754_v13 }
0x15be   :  { %v756_v32 = vadd.f32 %v1964_v11, %v755_v21 }
0x15c0   :  { %v760_v25 = vsel %vm759_vm13, %v1964_v11, %v756_v32 }
0x15c1   :  { %v765_v29 = vsel %vm762_vm14, %v764_v27, %v760_v25 }
0x15c2   :  { %v771_v36 = vmul.f32 %v769_v35, %v765_v29 }
0x161f   :  { %v774_v28 = vpop.permute.xlu0 %773 }
0x1620   :  { %v776_v34 = vmul.f32 %v774_v28, %v765_v29 }
0x1622   :  { %778 = vrot.lane.b32.xlu1 %v776_v34, %s2097_s24 }
0x1694   :  { %v779_v37 = vpop.permute.xlu1 %778 }
0x1695   :  { %v781_v39 = vadd.f32 %v779_v37, %v771_v36 }
0x1697   :  { %1965 = vtanh.f32 %v781_v39  ;;  %v839_v4 = vrot.slane %v781_v39, 6 }
0x169d   :  { %v1966_v40 = vpop.eup %1965 }
0x169e   :  { %784 = vrot.lane.b32.xlu2 %v1966_v40, %s2096_s23 }
0x16f8   :  { %v785_v41 = vpop.permute.xlu2 %784 }
0x16f9   :  { %v2282_v43 = vmul.f32 %v785_v41, %v765_v29 }
0x16fb   :  { %v793_v44 = vpack.c.bf16 %v2282_v43, %v2282_v43 }
0x16fd   :  { %v795_v45 = vrot.slane %v793_v44, 1 }
0x16ff   :  { %796 = vrot.lane.b32.xlu0 %v795_v45, %s2097_s24 }
0x1771   :  { %v797_v46 = vpop.permute.xlu0 %796 }
0x1772   :  { %1840 = vmatmul.msk.bf16.vlgmr.msrb.gmra.mxu2 %vm41_vm0, %v797_v46 }
0x17f5   :  { %v810_v47 = vpop.f32.mrf.mxu2 }
0x17f6   :  { %v815_v50 = vrot.slane %v810_v47, 4 }
0x17f8   :  { %v817_v51 = vadd.f32 %v815_v50, %v2266_v42 }
0x17fa   :  { %1967 = vtanh.f32 %v817_v51  ;;  %v1841_v54 = vmul.f32 -1.442695, %v817_v51 }
0x17fc   :  { %1969 = vpow2.f32 %v1841_v54 }
0x17fd   :  { %v812_v52 = vpop.f32.mrf.mxu2 }
0x1800   :  { %v1968_v53 = vpop.eup %1967 }
0x1801   :  { %843 = vrot.lane.b32.xlu1 %v1968_v53, %s2096_s23 }
0x1802   :  { %v1970_v55 = vpop.eup %1969 }
0x1803   :  { %v821_v56 = vadd.f32 1.0, %v1970_v55 }
0x1805   :  { %1971 = vrcp.f32 %v821_v56  ;;  %v833_v61 = vand.u32 2147483648, %v821_v56  ;;  %vm827_vm1 = vweird.f32 %v821_v56  ;;  %v831_v62 = vand.u32 2147483647, %v821_v56 }
0x1807   :  { %v834_v0 = vor.u32 1.1754944e-38, %v833_v61  ;;  %vm832_vm4 = vcmp.eq.f32.partialorder %v831_v62, 8.507059e+37 }
0x180b   :  { %v1972_v24 = vpop.eup %1971 }
0x180c   :  { %v823_v30 = vmul.f32 %v1972_v24, %v821_v56  ;;  %vm828_vm15 = vweird.f32 %v1972_v24  ;;  %v2035_v56 = vld [vmem:[#allocation3 + $0x28] ss:$0 sm:$0xff] }
0x180d   :  { %vm829_vm3 = vmor %vm827_vm1, %vm828_vm15 }
0x180e   :  { %v824_v57 = vsub.f32 1.0, %v823_v30 }
0x1810   :  { %v825_v58 = vmul.f32 %v1972_v24, %v824_v57 }
0x1812   :  { %v826_v59 = vadd.f32 %v1972_v24, %v825_v58 }
0x1814   :  { %v830_v63 = vsel %vm829_vm3, %v1972_v24, %v826_v59  ;;  %v2309_v24 = vadd.f32 %v2035_v56, %v2213_v31 }
0x1815   :  { %v835_v3 = vsel %vm832_vm4, %v834_v0, %v830_v63 }
0x1816   :  { %v841_v6 = vmul.f32 %v839_v4, %v835_v3 }
0x1873   :  { %v844_v1 = vpop.permute.xlu1 %843 }
0x1874   :  { %v846_v26 = vmul.f32 %v844_v1, %v835_v3 }
0x1876   :  { %848 = vrot.lane.b32.xlu2 %v846_v26, %s2097_s24 }
0x18d0   :  { %v849_v7 = vpop.permute.xlu2 %848 }
0x18d1   :  { %v851_v8 = vadd.f32 %v849_v7, %v841_v6 }
0x18d3   :  { %1973 = vtanh.f32 %v851_v8  ;;  %v909_v44 = vrot.slane %v851_v8, 6 }
0x18d9   :  { %v1974_v9 = vpop.eup %1973 }
0x18da   :  { %854 = vrot.lane.b32.xlu0 %v1974_v9, %s2096_s23 }
0x194c   :  { %v855_v10 = vpop.permute.xlu0 %854 }
0x194d   :  { %v2292_v12 = vmul.f32 %v855_v10, %v835_v3 }
0x194f   :  { %v863_v14 = vpack.c.bf16 %v2292_v12, %v2292_v12 }
0x1951   :  { %v865_v15 = vrot.slane %v863_v14, 2 }
0x1953   :  { %866 = vrot.lane.b32.xlu1 %v865_v15, %s2097_s24 }
0x19c5   :  { %v867_v17 = vpop.permute.xlu1 %866 }
0x19c6   :  { %1842 = vmatmul.msk.bf16.vlgmr.msrb.gmra.mxu3 %vm41_vm0, %v867_v17 }
0x1a49   :  { %v880_v18 = vpop.f32.mrf.mxu3 }
0x1a4a   :  { %v885_v11 = vrot.slane %v880_v18, 2 }
0x1a4c   :  { %v887_v19 = vadd.f32 %v885_v11, %v2266_v42 }
0x1a4e   :  { %1975 = vtanh.f32 %v887_v19  ;;  %v1843_v32 = vmul.f32 -1.442695, %v887_v19 }
0x1a50   :  { %1977 = vpow2.f32 %v1843_v32 }
0x1a51   :  { %v882_v13 = vpop.f32.mrf.mxu3 }
0x1a54   :  { %v1976_v21 = vpop.eup %1975 }
0x1a55   :  { %913 = vrot.lane.b32.xlu2 %v1976_v21, %s2096_s23 }
0x1a56   :  { %v1978_v22 = vpop.eup %1977 }
0x1a57   :  { %v891_v23 = vadd.f32 1.0, %v1978_v22 }
0x1a59   :  { %1979 = vrcp.f32 %v891_v23  ;;  %v903_v35 = vand.u32 2147483648, %v891_v23  ;;  %vm897_vm6 = vweird.f32 %v891_v23  ;;  %v901_v36 = vand.u32 2147483647, %v891_v23 }
0x1a5b   :  { %v904_v37 = vor.u32 1.1754944e-38, %v903_v35  ;;  %vm902_vm8 = vcmp.eq.f32.partialorder %v901_v36, 8.507059e+37 }
0x1a5f   :  { %v1980_v25 = vpop.eup %1979 }
0x1a60   :  { %v893_v27 = vmul.f32 %v1980_v25, %v891_v23  ;;  %vm898_vm5 = vweird.f32 %v1980_v25 }
0x1a61   :  { %vm899_vm7 = vmor %vm897_vm6, %vm898_vm5 }
0x1a62   :  { %v894_v28 = vsub.f32 1.0, %v893_v27 }
0x1a64   :  { %v895_v29 = vmul.f32 %v1980_v25, %v894_v28 }
0x1a66   :  { %v896_v34 = vadd.f32 %v1980_v25, %v895_v29 }
0x1a68   :  { %v900_v42 = vsel %vm899_vm7, %v1980_v25, %v896_v34 }
0x1a69   :  { %v905_v40 = vsel %vm902_vm8, %v904_v37, %v900_v42 }
0x1a6a   :  { %v911_v45 = vmul.f32 %v909_v44, %v905_v40 }
0x1aaf   :  { %v914_v39 = vpop.permute.xlu2 %913 }
0x1ab0   :  { %v916_v41 = vmul.f32 %v914_v39, %v905_v40 }
0x1ab2   :  { %918 = vrot.lane.b32.xlu0 %v916_v41, %s2097_s24 }
0x1b24   :  { %v919_v46 = vpop.permute.xlu0 %918 }
0x1b25   :  { %v921_v47 = vadd.f32 %v919_v46, %v911_v45 }
0x1b27   :  { %1981 = vtanh.f32 %v921_v47  ;;  %v976_v15 = vrot.slane %v921_v47, 6 }
0x1b2d   :  { %v1982_v50 = vpop.eup %1981 }
0x1b2e   :  { %924 = vrot.lane.b32.xlu1 %v1982_v50, %s2096_s23 }
0x1ba0   :  { %v925_v51 = vpop.permute.xlu1 %924 }
0x1ba1   :  { %v2302_v52 = vmul.f32 %v925_v51, %v905_v40 }
0x1ba3   :  { %v933_v53 = vpack.c.bf16 %v2302_v52, %v2302_v52 }
0x1ba5   :  { %v935_v54 = vrot.slane %v933_v53, 3 }
0x1ba7   :  { %936 = vrot.lane.b32.xlu2 %v935_v54, %s2097_s24 }
0x1c01   :  { %v937_v55 = vpop.permute.xlu2 %936 }
0x1c02   :  { %1844 = vmatmul.msk.bf16.vlgmr.msrb.gmra.mxu1 %vm41_vm0, %v937_v55 }
0x1c7f   :  { %v950_v30 = vpop.f32.mrf.mxu1 }
0x1c80   :  { %v954_v57 = vadd.f32 %v950_v30, %v2309_v24 }
0x1c82   :  { %1983 = vtanh.f32 %v954_v57  ;;  %v1845_v61 = vmul.f32 -1.442695, %v954_v57 }
0x1c84   :  { %1985 = vpow2.f32 %v1845_v61 }
0x1c87   :  { %v952_v58 = vpop.f32.mrf.mxu1 }
0x1c88   :  { %v1984_v59 = vpop.eup %1983 }
0x1c89   :  { %980 = vrot.lane.b32.xlu0 %v1984_v59, %s2096_s23 }
0x1c8a   :  { %v1986_v62 = vpop.eup %1985 }
0x1c8b   :  { %v958_v63 = vadd.f32 1.0, %v1986_v62 }
0x1c8d   :  { %1987 = vrcp.f32 %v958_v63  ;;  %v970_v31 = vand.u32 2147483648, %v958_v63  ;;  %vm964_vm10 = vweird.f32 %v958_v63  ;;  %v968_v6 = vand.u32 2147483647, %v958_v63 }
0x1c8f   :  { %v971_v8 = vor.u32 1.1754944e-38, %v970_v31  ;;  %vm969_vm12 = vcmp.eq.f32.partialorder %v968_v6, 8.507059e+37 }
0x1c93   :  { %v1988_v0 = vpop.eup %1987 }
0x1c94   :  { %v960_v1 = vmul.f32 %v1988_v0, %v958_v63  ;;  %vm965_vm9 = vweird.f32 %v1988_v0 }
0x1c95   :  { %vm966_vm11 = vmor %vm964_vm10, %vm965_vm9 }
0x1c96   :  { %v961_v3 = vsub.f32 1.0, %v960_v1 }
0x1c98   :  { %v962_v26 = vmul.f32 %v1988_v0, %v961_v3 }
0x1c9a   :  { %v963_v4 = vadd.f32 %v1988_v0, %v962_v26 }
0x1c9c   :  { %v967_v7 = vsel %vm966_vm11, %v1988_v0, %v963_v4  ;;  %vm308_vm11 = vcmask 259076  }
0x1c9d   :  { %v972_v10 = vsel %vm969_vm12, %v971_v8, %v967_v7  ;;  %vm237_vm12 = vcmask 257026  }
0x1c9e   :  { %v978_v17 = vmul.f32 %v976_v15, %v972_v10 }
0x1cfb   :  { %v981_v9 = vpop.permute.xlu0 %980 }
0x1cfc   :  { %v983_v14 = vmul.f32 %v981_v9, %v972_v10 }
0x1cfe   :  { %985 = vrot.lane.b32.xlu1 %v983_v14, %s2097_s24 }
0x1d70   :  { %v986_v18 = vpop.permute.xlu1 %985 }
0x1d71   :  { %v988_v11 = vadd.f32 %v986_v18, %v978_v17 }
0x1d73   :  { %1989 = vtanh.f32 %v988_v11  ;;  %v1045_v54 = vrot.slane %v988_v11, 6 }
0x1d79   :  { %v1990_v19 = vpop.eup %1989 }
0x1d7a   :  { %991 = vrot.lane.b32.xlu2 %v1990_v19, %s2096_s23 }
0x1dd4   :  { %v992_v13 = vpop.permute.xlu2 %991 }
0x1dd5   :  { %v2315_v21 = vmul.f32 %v992_v13, %v972_v10 }
0x1dd7   :  { %v1000_v32 = vpack.c.bf16 %v2315_v21, %v2315_v21 }
0x1dd9   :  { %1002 = vrot.lane.b32.xlu0 %v1000_v32, %s2097_s24 }
0x1e4b   :  { %v1003_v22 = vpop.permute.xlu0 %1002 }
0x1e4c   :  { %1846 = vmatmul.msk.bf16.vlgmr.msrb.gmra.mxu0 %vm41_vm0, %v1003_v22 }
0x1ec9   :  { %v1016_v23 = vpop.f32.mrf.mxu0 }
0x1eca   :  { %v1021_v25 = vrot.slane %v1016_v23, 6 }
0x1ecc   :  { %v1023_v27 = vadd.f32 %v1021_v25, %v2309_v24 }
0x1ece   :  { %1991 = vtanh.f32 %v1023_v27  ;;  %v1847_v34 = vmul.f32 -1.442695, %v1023_v27 }
0x1ed0   :  { %1993 = vpow2.f32 %v1847_v34 }
0x1ed1   :  { %v1018_v28 = vpop.f32.mrf.mxu0 }
0x1ed4   :  { %v1992_v29 = vpop.eup %1991 }
0x1ed5   :  { %1049 = vrot.lane.b32.xlu1 %v1992_v29, %s2096_s23 }
0x1ed6   :  { %v1994_v35 = vpop.eup %1993 }
0x1ed7   :  { %v1027_v36 = vadd.f32 1.0, %v1994_v35 }
0x1ed9   :  { %1995 = vrcp.f32 %v1027_v36  ;;  %v1039_v44 = vand.u32 2147483648, %v1027_v36  ;;  %vm1033_vm14 = vweird.f32 %v1027_v36  ;;  %v1037_v45 = vand.u32 2147483647, %v1027_v36 }
0x1edb   :  { %v1040_v47 = vor.u32 1.1754944e-38, %v1039_v44  ;;  %vm1038_vm1 = vcmp.eq.f32.partialorder %v1037_v45, 8.507059e+37 }
0x1edf   :  { %v1996_v42 = vpop.eup %1995 }
0x1ee0   :  { %v1029_v37 = vmul.f32 %v1996_v42, %v1027_v36  ;;  %vm1034_vm13 = vweird.f32 %v1996_v42 }
0x1ee1   :  { %vm1035_vm15 = vmor %vm1033_vm14, %vm1034_vm13  ;;  %vm167_vm13 = vcmask 254976   ;;  %vm379_vm14 = vcmask 261126  }
0x1ee2   :  { %v1030_v39 = vsub.f32 1.0, %v1029_v37 }
0x1ee4   :  { %v1031_v40 = vmul.f32 %v1996_v42, %v1030_v39 }
0x1ee6   :  { %v1032_v41 = vadd.f32 %v1996_v42, %v1031_v40 }
0x1ee8   :  { %v1036_v46 = vsel %vm1035_vm15, %v1996_v42, %v1032_v41  ;;  %vm1354_vm15 = vcmask 523264  }
0x1ee9   :  { %v1041_v51 = vsel %vm1038_vm1, %v1040_v47, %v1036_v46  ;;  %vm1376_vm1 = vcmask 1040384  }
0x1eea   :  { %v1047_v55 = vmul.f32 %v1045_v54, %v1041_v51 }
0x1f47   :  { %v1050_v50 = vpop.permute.xlu1 %1049 }
0x1f48   :  { %v1052_v53 = vmul.f32 %v1050_v50, %v1041_v51 }
0x1f4a   :  { %1054 = vrot.lane.b32.xlu2 %v1052_v53, %s2097_s24 }
0x1fa4   :  { %v1055_v56 = vpop.permute.xlu2 %1054 }
0x1fa5   :  { %v1057_v30 = vadd.f32 %v1055_v56, %v1047_v55 }
0x1fa7   :  { %1997 = vtanh.f32 %v1057_v30  ;;  %v1115_v23 = vrot.slane %v1057_v30, 6 }
0x1fad   :  { %v1998_v57 = vpop.eup %1997 }
0x1fae   :  { %1060 = vrot.lane.b32.xlu0 %v1998_v57, %s2096_s23 }
0x2020   :  { %v1061_v58 = vpop.permute.xlu0 %1060 }
0x2021   :  { %v2325_v59 = vmul.f32 %v1061_v58, %v1041_v51 }
0x2023   :  { %v1069_v61 = vpack.c.bf16 %v2325_v59, %v2325_v59 }
0x2025   :  { %v1071_v62 = vrot.slane %v1069_v61, 1 }
0x2027   :  { %1072 = vrot.lane.b32.xlu1 %v1071_v62, %s2097_s24 }
0x2099   :  { %v1073_v63 = vpop.permute.xlu1 %1072 }
0x209a   :  { %1848 = vmatmul.msk.bf16.vlgmr.msra.gmra.mxu2 %vm41_vm0, %v1073_v63 }
0x211d   :  { %v1086_v0 = vpop.f32.mrf.mxu2 }
0x211e   :  { %v1091_v1 = vrot.slane %v1086_v0, 4 }
0x2120   :  { %v1093_v3 = vadd.f32 %v1091_v1, %v2309_v24 }
0x2122   :  { %1999 = vtanh.f32 %v1093_v3  ;;  %v1849_v31 = vmul.f32 -1.442695, %v1093_v3 }
0x2124   :  { %2001 = vpow2.f32 %v1849_v31 }
0x2125   :  { %v1088_v26 = vpop.f32.mrf.mxu2 }
0x2128   :  { %v2000_v4 = vpop.eup %1999 }
0x2129   :  { %1119 = vrot.lane.b32.xlu2 %v2000_v4, %s2096_s23 }
0x212a   :  { %v2002_v6 = vpop.eup %2001 }
0x212b   :  { %v1097_v7 = vadd.f32 1.0, %v2002_v6 }
0x212d   :  { %2003 = vrcp.f32 %v1097_v7  ;;  %v1109_v17 = vand.u32 2147483648, %v1097_v7  ;;  %vm1103_vm4 = vweird.f32 %v1097_v7  ;;  %v1107_v18 = vand.u32 2147483647, %v1097_v7 }
0x212f   :  { %v1110_v19 = vor.u32 1.1754944e-38, %v1109_v17  ;;  %vm1108_vm6 = vcmp.eq.f32.partialorder %v1107_v18, 8.507059e+37  ;;  %v1228_v18 = vld [vmem:[#allocation3 + $0x88] sm:$0xff] }
0x2133   :  { %v2004_v8 = vpop.eup %2003 }
0x2134   :  { %v1099_v9 = vmul.f32 %v2004_v8, %v1097_v7  ;;  %vm1104_vm3 = vweird.f32 %v2004_v8 }
0x2135   :  { %vm1105_vm5 = vmor %vm1103_vm4, %vm1104_vm3  ;;  %vm1472_vm4 = vcmask 15360  }
0x2136   :  { %v1100_v10 = vsub.f32 1.0, %v1099_v9 }
0x2138   :  { %v1101_v14 = vmul.f32 %v2004_v8, %v1100_v10 }
0x213a   :  { %v1102_v15 = vadd.f32 %v2004_v8, %v1101_v14  ;;  %v1339_v14 = vld [vmem:[#allocation3 + $0xb8] sm:$0xff] }
0x213c   :  { %v1106_v11 = vsel %vm1105_vm5, %v2004_v8, %v1102_v15  ;;  %v1344_v8 = vld [vmem:[#allocation3 + $0xe0] sm:$0xff] }
0x213d   :  { %v1111_v32 = vsel %vm1108_vm6, %v1110_v19, %v1106_v11  ;;  %v1340_v15 = vld [vmem:[#allocation3 + $0xc0] sm:$0xff]  ;;  %v1225_v11 = vld [vmem:[#allocation3 + $0x70] sm:$0xff]  ;;  %v1226_v19 = vld [vmem:[#allocation3 + $0x78] sm:$0xff] }
0x213e   :  { %v1117_v25 = vmul.f32 %v1115_v23, %v1111_v32  ;;  %v1348_v17 = vpack.c.bf16 %v1340_v15, %v1339_v14  ;;  %v1215_v23 = vld [vmem:[#allocation3 + $0x60] sm:$0xff] }
0x2183   :  { %v1120_v13 = vpop.permute.xlu2 %1119 }
0x2184   :  { %v1122_v22 = vmul.f32 %v1120_v13, %v1111_v32  ;;  %v1231_v13 = vpack.c.bf16 %v1226_v19, %v1225_v11 }
0x2186   :  { %1124 = vrot.lane.b32.xlu0 %v1122_v22, %s2097_s24 }
0x21f8   :  { %v1125_v27 = vpop.permute.xlu0 %1124 }
0x21f9   :  { %v1127_v28 = vadd.f32 %v1125_v27, %v1117_v25  ;;  %v1216_v25 = vld [vmem:[#allocation3 + $0x68] sm:$0xff] }
0x21fa   :  { %v1220_v27 = vpack.c.bf16 %v1216_v25, %v1215_v23 }
0x21fb   :  { %2005 = vtanh.f32 %v1127_v28  ;;  %v1185_v0 = vrot.slane %v1127_v28, 6  ;;  %v1287_v28 = vld [vmem:[#allocation3 + $0x90] sm:$0xff] }
0x21fc   :  { %1270 = vmatpush.bf16.msra.mxu0 %v1220_v27 }
0x2201   :  { %v2006_v29 = vpop.eup %2005 }
0x2202   :  { %1130 = vrot.lane.b32.xlu1 %v2006_v29, %s2096_s23  ;;  %v1288_v29 = vld [vmem:[#allocation3 + $0x98] sm:$0xff] }
0x2274   :  { %v1131_v34 = vpop.permute.xlu1 %1130 }
0x2275   :  { %v2335_v35 = vmul.f32 %v1131_v34, %v1111_v32  ;;  %v1289_v32 = vld [vmem:[#allocation3 + $0xa0] sm:$0xff]  ;;  %v1293_v34 = vpack.c.bf16 %v1288_v29, %v1287_v28 }
0x2277   :  { %v1139_v36 = vpack.c.bf16 %v2335_v35, %v2335_v35 }
0x2279   :  { %v1141_v42 = vrot.slane %v1139_v36, 2  ;;  %v1214_v36 = vld [vmem:[#allocation3 + $0x58] sm:$0xff] }
0x227b   :  { %1142 = vrot.lane.b32.xlu2 %v1141_v42, %s2097_s24 }
0x22d5   :  { %v1143_v37 = vpop.permute.xlu2 %1142 }
0x22d6   :  { %1850 = vmatmul.msk.bf16.vlgmr.msra.gmra.mxu3 %vm41_vm0, %v1143_v37 }
0x2359   :  { %v1156_v39 = vpop.f32.mrf.mxu3 }
0x235a   :  { %v1161_v40 = vrot.slane %v1156_v39, 2 }
0x235c   :  { %v1163_v41 = vadd.f32 %v1161_v40, %v2309_v24 }
0x235e   :  { %2007 = vtanh.f32 %v1163_v41  ;;  %v1851_v46 = vmul.f32 -1.442695, %v1163_v41 }
0x2360   :  { %2009 = vpow2.f32 %v1851_v46 }
0x2361   :  { %v1158_v44 = vpop.f32.mrf.mxu3 }
0x2364   :  { %v2008_v45 = vpop.eup %2007 }
0x2365   :  { %1189 = vrot.lane.b32.xlu0 %v2008_v45, %s2096_s23 }
0x2366   :  { %v2010_v47 = vpop.eup %2009 }
0x2367   :  { %v1167_v50 = vadd.f32 1.0, %v2010_v47 }
0x2369   :  { %2011 = vrcp.f32 %v1167_v50  ;;  %v1179_v30 = vand.u32 2147483648, %v1167_v50  ;;  %vm1173_vm8 = vweird.f32 %v1167_v50  ;;  %v1177_v57 = vand.u32 2147483647, %v1167_v50 }
0x236b   :  { %v1180_v58 = vor.u32 1.1754944e-38, %v1179_v30  ;;  %vm1178_vm10 = vcmp.eq.f32.partialorder %v1177_v57, 8.507059e+37 }
0x236f   :  { %v2012_v51 = vpop.eup %2011 }
0x2370   :  { %v1169_v53 = vmul.f32 %v2012_v51, %v1167_v50  ;;  %vm1174_vm7 = vweird.f32 %v2012_v51 }
0x2371   :  { %vm1175_vm9 = vmor %vm1173_vm8, %vm1174_vm7  ;;  %vm1482_vm8 = vcmask 11264  }
0x2372   :  { %v1170_v54 = vsub.f32 1.0, %v1169_v53  ;;  %v1617_v53 = vld [vmem:[#allocation3 + $0x130] sm:$0xff] }
0x2374   :  { %v1171_v55 = vmul.f32 %v2012_v51, %v1170_v54 }
0x2376   :  { %v1172_v56 = vadd.f32 %v2012_v51, %v1171_v55  ;;  %v1614_v55 = vld [vmem:[#allocation3 + $0x118] sm:$0xff] }
0x2378   :  { %v1176_v24 = vsel %vm1175_vm9, %v2012_v51, %v1172_v56  ;;  %v1616_v51 = vld [vmem:[#allocation3 + $0x128] sm:$0xff]  ;;  %v1615_v56 = vld [vmem:[#allocation3 + $0x120] sm:$0xff] }
0x2379   :  { %v1181_v62 = vsel %vm1178_vm10, %v1180_v58, %v1176_v24  ;;  %v1621_v54 = vpack.c.bf16 %v1617_v53, %v1616_v51  ;;  %v1620_v30 = vpack.c.bf16 %v1615_v56, %v1614_v55  ;;  %v1612_v24 = vld [vmem:[#allocation3 + $0x108] sm:$0xff]  ;;  %v1613_v58 = vld [vmem:[#allocation3 + $0x110] sm:$0xff] }
0x237a   :  { %v1187_v1 = vmul.f32 %v1185_v0, %v1181_v62 }
0x23d7   :  { %v1190_v61 = vpop.permute.xlu0 %1189 }
0x23d8   :  { %v1192_v63 = vmul.f32 %v1190_v61, %v1181_v62 }
0x23da   :  { %1194 = vrot.lane.b32.xlu1 %v1192_v63, %s2097_s24 }
0x244c   :  { %v1195_v3 = vpop.permute.xlu1 %1194 }
0x244d   :  { %v1197_v26 = vadd.f32 %v1195_v3, %v1187_v1  ;;  %v1619_v1 = vpack.c.bf16 %v1613_v58, %v1612_v24  ;;  %v1610_v3 = vld [vmem:[#allocation3 + $0xf8] sm:$0xff] }
0x244f   :  { %2013 = vtanh.f32 %v1197_v26  ;;  %v1611_v26 = vld [vmem:[#allocation3 + $0x100] sm:$0xff] }
0x2455   :  { %v2014_v4 = vpop.eup %2013 }
0x2456   :  { %1200 = vrot.lane.b32.xlu2 %v2014_v4, %s2096_s23 }
0x245e   :  { %305 = vrot.lane.b32.xlu2 %v2189_v48, %s2097_s24 }
0x2466   :  { %513 = vrot.lane.b32.xlu2 %v2234_v33, %s2097_s24  ;;  %v1346_v33 = vld [vmem:[#allocation3 + $0xf0] sm:$0xff] }
0x246e   :  { %720 = vrot.lane.b32.xlu2 %v2272_v5, %s2097_s24  ;;  %v1343_v5 = vld [vmem:[#allocation3 + $0xd8] sm:$0xff] }
0x246f   :  { %v1350_v10 = vpack.c.bf16 %v1344_v8, %v1343_v5 }
0x2476   :  { %234 = vrot.lane.b32.xlu2 %v2177_v16, %s2097_s24  ;;  %v1345_v16 = vld [vmem:[#allocation3 + $0xe8] sm:$0xff] }
0x247e   :  { %996 = vrot.lane.b32.xlu2 %v2315_v21, %s2097_s24  ;;  %v1351_v21 = vpack.c.bf16 %v1346_v33, %v1345_v16 }
0x2480   :  { %1362 = vmatpush.bf16.msrb.mxu3 %v1351_v21 }
0x2484   :  { %1363 = vmatpush.bf16.msrb.mxu3 %v1350_v10 }
0x24b0   :  { %v1201_v31 = vpop.permute.xlu2 %1200 }
0x24b1   :  { %v1203_v6 = vmul.f32 %v1201_v31, %v1181_v62 }
0x24b3   :  { %v1334_v7 = vrot.slane %v1203_v6, 1  ;;  %1205 = vrot.lane.b32.xlu0 %v1203_v6, %s2097_s24 }
0x24b5   :  { %1335 = vrot.lane.b32.xlu1 %v1334_v7, %s2096_s23  ;;  %v1618_v7 = vpack.c.bf16 %v1611_v26, %v1610_v3 }
0x24b8   :  { %v306_v48 = vpop.permute.xlu2 %305 }
0x24b9   :  { %309 = vst.msk [vmem:[#allocation2] sm:$0x30] %vm308_vm11, %v306_v48 }
0x24bb   :  { %376 = vrot.lane.b32.xlu0 %v2202_v20, %s2097_s24 }
0x24bd   :  { %444 = vrot.lane.b32.xlu1 %v2222_v60, %s2097_s24 }
0x24c0   :  { %v514_v9 = vpop.permute.xlu2 %513 }
0x24c1   :  { %516 = vst.msk [vmem:[#allocation2 + $0x8] sm:$0xc] %vm237_vm12, %v514_v9 }
0x24c3   :  { %583 = vrot.lane.b32.xlu0 %v2246_v2, %s2097_s24 }
0x24c5   :  { %653 = vrot.lane.b32.xlu1 %v2258_v38, %s2097_s24  ;;  %v1341_v38 = vld [vmem:[#allocation3 + $0xc8] sm:$0xff] }
0x24c8   :  { %v721_v20 = vpop.permute.xlu2 %720 }
0x24c9   :  { %723 = vst.msk [vmem:[#allocation2 + $0x10] sm:$0x3] %vm167_vm13, %v721_v20 }
0x24cb   :  { %789 = vrot.lane.b32.xlu0 %v2282_v43, %s2097_s24 }
0x24cd   :  { %164 = vrot.lane.b32.xlu1 %v2165_v49, %s2097_s24  ;;  %v1342_v49 = vld [vmem:[#allocation3 + $0xd0] sm:$0xff] }
0x24ce   :  { %v1349_v43 = vpack.c.bf16 %v1342_v49, %v1341_v38 }
0x24d0   :  { %v235_v60 = vpop.permute.xlu2 %234  ;;  %1364 = vmatpush.bf16.msrb.mxu3 %v1349_v43 }
0x24d1   :  { %238 = vst.msk [vmem:[#allocation2] sm:$0xc] %vm237_vm12, %v235_v60 }
0x24d3   :  { %859 = vrot.lane.b32.xlu0 %v2292_v12, %s2097_s24  ;;  %v1227_v12 = vld [vmem:[#allocation3 + $0x80] sm:$0xff] }
0x24d4   :  { %1365 = vmatpush.bf16.msrb.mxu3 %v1348_v17 }
0x24d5   :  { %929 = vrot.lane.b32.xlu1 %v2302_v52, %s2097_s24  ;;  %v1232_v52 = vpack.c.bf16 %v1228_v18, %v1227_v12 }
0x24d7   :  { %1245 = vmatpush.bf16.msra.mxu1 %v1232_v52 }
0x24d8   :  { %v997_v2 = vpop.permute.xlu2 %996 }
0x24d9   :  { %999 = vst.msk [vmem:[#allocation2 + $0x18] sm:$0x3] %vm167_vm13, %v997_v2 }
0x24db   :  { %1065 = vrot.lane.b32.xlu0 %v2325_v59, %s2097_s24  ;;  %v1290_v59 = vld [vmem:[#allocation3 + $0xa8] sm:$0xff]  ;;  %1246 = vmatpush.bf16.msra.mxu1 %v1231_v13 }
0x24dc   :  { %v1294_v22 = vpack.c.bf16 %v1290_v59, %v1289_v32 }
0x24dd   :  { %1135 = vrot.lane.b32.xlu1 %v2335_v35, %s2097_s24  ;;  %v1213_v35 = vld [vmem:[#allocation3 + $0x50] sm:$0xff] }
0x24de   :  { %1307 = vmatpush.bf16.msrb.mxu2 %v1294_v22  ;;  %v1219_v37 = vpack.c.bf16 %v1214_v36, %v1213_v35 }
0x24e0   :  { %1271 = vmatpush.bf16.msra.mxu0 %v1219_v37  ;;  %v1883_v37 = vld [vmem:[#allocation3 + $0xb0] ss:$0 sm:$0xff] }
0x24e2   :  { %1308 = vmatpush.bf16.msrb.mxu2 %v1293_v34 }
0x24e6   :  { %1647 = vmatpush.bf16.msra.mxu2 %v1621_v54 }
0x24ea   :  { %1648 = vmatpush.bf16.msra.mxu2 %v1620_v30 }
0x24ee   :  { %1649 = vmatpush.bf16.msra.mxu2 %v1619_v1 }
0x24f2   :  { %1650 = vmatpush.bf16.msra.mxu2 %v1618_v7 }
0x2525   :  { %v1206_v42 = vpop.permute.xlu0 %1205 }
0x2526   :  { %1208 = vst.msk [vmem:[#allocation2 + $0x18] sm:$0xc0] %vm379_vm14, %v1206_v42 }
0x2527   :  { %v1336_v39 = vpop.permute.xlu1 %1335 }
0x2528   :  { %v1338_v40 = vsel %vm41_vm0, %v1206_v42, %v1336_v39 }
0x2529   :  { %v1347_v41 = vpack.c.bf16 %v1338_v40, %v1338_v40 }
0x252b   :  { %v1353_v44 = vrot.slane %v1347_v41, 3 }
0x252d   :  { %v377_v45 = vpop.permute.xlu0 %376  ;;  %1858 = vmatmul.msk.bf16.vlgmr.msrb.gmra.mxu3 %vm1354_vm15, %v1353_v44 }
0x252e   :  { %380 = vst.msk [vmem:[#allocation2] sm:$0xc0] %vm379_vm14, %v377_v45 }
0x252f   :  { %v445_v46 = vpop.permute.xlu1 %444 }
0x2530   :  { %447 = vst.msk [vmem:[#allocation2 + $0x8] sm:$0x3] %vm167_vm13, %v445_v46 }
0x2535   :  { %v584_v47 = vpop.permute.xlu0 %583 }
0x2536   :  { %586 = vst.msk [vmem:[#allocation2 + $0x8] sm:$0x30] %vm308_vm11, %v584_v47 }
0x2537   :  { %v654_v50 = vpop.permute.xlu1 %653  ;;  %v1221_v62 = vld [vmem:[#allocation2 + $0x2] sm:$0xff] }
0x2538   :  { %656 = vst.msk [vmem:[#allocation2 + $0x8] sm:$0xc0] %vm379_vm14, %v654_v50  ;;  %v1283_v31 = vld [vmem:[#allocation2 + $0x4] sm:$0xff] }
0x253d   :  { %v790_v57 = vpop.permute.xlu0 %789 }
0x253e   :  { %792 = vst.msk [vmem:[#allocation2 + $0x10] sm:$0xc] %vm237_vm12, %v790_v57 }
0x253f   :  { %v165_v61 = vpop.permute.xlu1 %164  ;;  %v1222_v63 = vld [vmem:[#allocation2 + $0xa] sm:$0xff] }
0x2540   :  { %168 = vst.msk [vmem:[#allocation2] sm:$0x3] %vm167_vm13, %v165_v61  ;;  %v1229_v0 = vpack.c.bf16 %v1222_v63, %v1221_v62  ;;  %v1210_v5 = vld [vmem:[#allocation2 + $0x8] sm:$0xff] }
0x2542   :  { %1852 = vmatmul.msk.bf16.vlgmr.msra.gmra.mxu1 %vm41_vm0, %v1229_v0  ;;  %v1409_v0 = vlaneseq }
0x2544   :  { %v2429_v1 = vshrl.u32 %v1409_v0, 7  ;;  %v2432_v26 = vand.u32 127, %v1409_v0 }
0x2545   :  { %v860_v4 = vpop.permute.xlu0 %859  ;;  %v1284_v6 = vld [vmem:[#allocation2 + $0xc] sm:$0xff] }
0x2546   :  { %862 = vst.msk [vmem:[#allocation2 + $0x10] sm:$0x30] %vm308_vm11, %v860_v4  ;;  %v1291_v48 = vpack.c.bf16 %v1284_v6, %v1283_v31  ;;  %v1418_v3 = vand.u32 1, %v2429_v1  ;;  %v1411_v4 = vadd.s32 8, %v2429_v1 }
0x2547   :  { %v930_v16 = vpop.permute.xlu1 %929  ;;  %v1209_v33 = vld [vmem:[#allocation2] sm:$0xff] }
0x2548   :  { %932 = vst.msk [vmem:[#allocation2 + $0x10] sm:$0xc0] %vm379_vm14, %v930_v16  ;;  %1856 = vmatmul.msk.bf16.vlgmr.msrb.gmra.mxu2 %vm41_vm0, %v1291_v48  ;;  %v1217_v21 = vpack.c.bf16 %v1210_v5, %v1209_v33  ;;  %vm1464_vm3 = vcmp.eq.s32.totalorder %v1418_v3, %v2432_v26  ;;  %v1425_v48 = vand.u32 1, %v1411_v4  ;;  %v1412_v16 = vadd.s32 16, %v2429_v1 }
0x254a   :  { %1854 = vmatmul.msk.bf16.vlgmr.msra.gmra.mxu0 %vm41_vm0, %v1217_v21  ;;  %vm1465_vm5 = vcmp.eq.s32.totalorder %v1425_v48, %v2432_v26 }
0x254d   :  { %v1066_v8 = vpop.permute.xlu0 %1065 }
0x254e   :  { %1068 = vst.msk [vmem:[#allocation2 + $0x18] sm:$0xc] %vm237_vm12, %v1066_v8  ;;  %v1432_v8 = vand.u32 1, %v1412_v16 }
0x254f   :  { %v1136_v9 = vpop.permute.xlu1 %1135  ;;  %v1223_v20 = vld [vmem:[#allocation2 + $0x12] sm:$0xff] }
0x2550   :  { %1138 = vst.msk [vmem:[#allocation2 + $0x18] sm:$0x30] %vm308_vm11, %v1136_v9  ;;  %v1211_v60 = vld [vmem:[#allocation2 + $0x10] sm:$0xff]  ;;  %vm1466_vm6 = vcmp.eq.s32.totalorder %v1432_v8, %v2432_v26  ;;  %v1413_v9 = vadd.s32 24, %v2429_v1 }
0x2555   :  { %v1212_v10 = vld [vmem:[#allocation2 + $0x18] sm:$0xf] }
0x2556   :  { %v1285_v38 = vld [vmem:[#allocation2 + $0x14] sm:$0xff]  ;;  %v1218_v14 = vpack.c.bf16 %v1212_v10, %v1211_v60 }
0x2557   :  { %v1224_v2 = vld [vmem:[#allocation2 + $0x1a] sm:$0xf] }
0x2558   :  { %v1286_v49 = vld [vmem:[#allocation2 + $0x1c] sm:$0xf]  ;;  %v1230_v43 = vpack.c.bf16 %v1224_v2, %v1223_v20  ;;  %v1439_v2 = vand.u32 1, %v1413_v9 }
0x2559   :  { %v1292_v15 = vpack.c.bf16 %v1286_v49, %v1285_v38 }
0x255a   :  { %1853 = vmatmul.msk.bf16.gmra.mxu1 %vm41_vm0, %v1230_v43  ;;  %1855 = vmatmul.msk.bf16.gmra.mxu0 %vm41_vm0, %v1218_v14  ;;  %vm1467_vm7 = vcmp.eq.s32.totalorder %v1439_v2, %v2432_v26 }
0x255b   :  { %1857 = vmatmul.msk.bf16.gmra.mxu2 %vm41_vm0, %v1292_v15 }
0x256b   :  { %1867 = vmatmul.msk.bf16.vlgmr.msra.gmra.mxu2 %vm1354_vm15, %v1353_v44 }
0x25b0   :  { %v1367_v17 = vpop.f32.mrf.mxu3 }
0x25b1   :  { %v1372_v12 = vrot.slane %v1367_v17, 7 }
0x25b3   :  { %1373 = vrot.lane.b32.xlu2 %v1372_v12, %s2098_s25 }
0x25b8   :  { %v1369_v18 = vpop.f32.mrf.mxu3 }
0x25bf   :  { %v1248_v23 = vpop.f32.mrf.mxu1 }
0x25c7   :  { %v1273_v22 = vpop.f32.mrf.mxu0  ;;  %v1250_v27 = vpop.f32.mrf.mxu1 }
0x25c8   :  { %v1274_v29 = vadd.f32 %v1273_v22, %v1248_v23 }
0x25cb   :  { %v1310_v52 = vpop.f32.mrf.mxu2 }
0x25cc   :  { %v1320_v42 = vadd.f32 %v1310_v52, %v1274_v29 }
0x25ce   :  { %v2408_v45 = vadd.f32 %v1883_v37, %v1320_v42 }
0x25cf   :  { %v1275_v25 = vpop.f32.mrf.mxu0 }
0x25d0   :  { %v1276_v28 = vadd.f32 %v1275_v25, %v1250_v27  ;;  %v1330_v50 = vmax.f32 %v2408_v45, 0.0  ;;  %v2037_v45 = vld [vmem:[%s2517_s0 + $0x10] sm:$0xff] }
0x25d3   :  { %v1312_v11 = vpop.f32.mrf.mxu2 }
0x25d4   :  { %v1321_v34 = vadd.f32 %v1312_v11, %v1276_v28 }
0x25d6   :  { %v2406_v41 = vadd.f32 %v1883_v37, %v1321_v34 }
0x25d7   :  { %v1253_v35 = vpop.f32.mrf.mxu1  ;;  %v1278_v36 = vpop.f32.mrf.mxu0 }
0x25d8   :  { %v1331_v47 = vmax.f32 %v2406_v41, 0.0  ;;  %v1279_v56 = vadd.f32 %v1278_v36, %v1253_v35  ;;  %v2036_v41 = vld [vmem:[%s2517_s0 + $0x18] sm:$0xff] }
0x25da   :  { %v1378_v54 = vpack.c.bf16 %v1331_v47, %v1330_v50 }
0x25de   :  { %v1315_v19 = vpop.f32.mrf.mxu2 }
0x25df   :  { %v1255_v51 = vpop.f32.mrf.mxu1  ;;  %v1280_v53 = vpop.f32.mrf.mxu0  ;;  %v1322_v57 = vadd.f32 %v1315_v19, %v1279_v56 }
0x25e0   :  { %v1281_v55 = vadd.f32 %v1280_v53, %v1255_v51 }
0x25e1   :  { %v2420_v58 = vadd.f32 %v1883_v37, %v1322_v57 }
0x25e3   :  { %v1332_v62 = vmax.f32 %v2420_v58, 0.0 }
0x25e6   :  { %v1317_v13 = vpop.f32.mrf.mxu2 }
0x25e7   :  { %v1323_v30 = vadd.f32 %v1317_v13, %v1281_v55 }
0x25e9   :  { %v2418_v24 = vadd.f32 %v1883_v37, %v1323_v30 }
0x25eb   :  { %v1333_v61 = vmax.f32 %v2418_v24, 0.0 }
0x25ed   :  { %v1379_v63 = vpack.c.bf16 %v1333_v61, %v1332_v62 }
0x25ee   :  { %v2403_v32 = vpop.f32.mrf.mxu2 }
0x25f6   :  { %v1654_v59 = vpop.f32.mrf.mxu2 }
0x260d   :  { %v1374_v39 = vpop.permute.xlu2 %1373 }
0x260e   :  { %v1377_v40 = vsel %vm1376_vm1, %v1367_v17, %v1374_v39 }
0x260f   :  { %v1380_v44 = vpack.c.bf16 %v1377_v40, %v1377_v40 }
0x2611   :  { %v1388_v46 = vsel %vm73_vm2, %v1380_v44, 0 }
0x2612   :  { %1397 = vmatpush.bf16.xpose.msra.mxu3 %v1388_v46 }
0x2619   :  { %1859 = vmatmul.msk.bf16.vlgmr.msra.gmra.mxu3 %vm73_vm2, %v1378_v54 }
0x2629   :  { %1860 = vmatmul.msk.bf16.gmra.mxu3 %vm73_vm2, %v1379_v63 }
0x269c   :  { %v1399_v31 = vpop.f32.mrf.mxu3 }
0x269d   :  { %v1468_v6 = vsel %vm1464_vm3, %v1399_v31, 0.0 }
0x269e   :  { %v1473_v7 = vsel %vm1472_vm4, %v1468_v6, 0.0 }
0x269f   :  { %1474 = vadd.xlane.f32.xlu2 %v1473_v7 }
0x26a4   :  { %v1401_v33 = vpop.f32.mrf.mxu3 }
0x26a5   :  { %v1469_v5 = vsel %vm1465_vm5, %v1401_v33, 0.0 }
0x26a6   :  { %v1476_v21 = vsel %vm1472_vm4, %v1469_v5, 0.0 }
0x26a7   :  { %1477 = vadd.xlane.f32.xlu2 %v1476_v21 }
0x26ac   :  { %v1404_v10 = vpop.f32.mrf.mxu3 }
0x26ad   :  { %v1470_v20 = vsel %vm1466_vm6, %v1404_v10, 0.0 }
0x26ae   :  { %v1479_v60 = vsel %vm1472_vm4, %v1470_v20, 0.0 }
0x26af   :  { %1480 = vadd.xlane.f32.xlu0 %v1479_v60 }
0x26b4   :  { %v1406_v38 = vpop.f32.mrf.mxu3 }
0x26b5   :  { %v1471_v49 = vsel %vm1467_vm7, %v1406_v38, 0.0 }
0x26b6   :  { %v1483_v43 = vsel %vm1482_vm8, %v1471_v49, 0.0 }
0x26b7   :  { %1484 = vadd.xlane.f32.xlu1 %v1483_v43 }
0x2712   :  { %v1475_v14 = vpop.xlane.xlu2 %1474 }
0x2713   :  { %v1861_v17 = vmul.f32 -1.442695, %v1475_v14  ;;  %v1570_v14 = vand.u32 1, %v2432_v26 }
0x271a   :  { %v1478_v15 = vpop.xlane.xlu2 %1477 }
0x271b   :  { %v1862_v12 = vmul.f32 -1.442695, %v1478_v15 }
0x271d   :  { %2015 = vpow2.f32 %v1862_v12 }
0x271e   :  { %2017 = vpow2.f32 %v1861_v17 }
0x2722   :  { %v1481_v18 = vpop.xlane.xlu0 %1480 }
0x2723   :  { %v1863_v52 = vmul.f32 -1.442695, %v1481_v18  ;;  %v2016_v11 = vpop.eup %2015 }
0x2724   :  { %v2018_v19 = vpop.eup %2017  ;;  %v2444_v13 = vadd.f32 1.0, %v2016_v11 }
0x2725   :  { %2019 = vpow2.f32 %v1863_v52  ;;  %v2446_v59 = vadd.f32 1.0, %v2018_v19 }
0x2726   :  { %2021 = vrcp.f32 %v2444_v13  ;;  %v1528_v6 = vand.u32 2147483648, %v2444_v13  ;;  %vm1522_vm4 = vweird.f32 %v2444_v13  ;;  %v1526_v21 = vand.u32 2147483647, %v2444_v13 }
0x2727   :  { %2023 = vrcp.f32 %v2446_v59  ;;  %vm1507_vm10 = vweird.f32 %v2446_v59  ;;  %v1513_v9 = vand.u32 2147483648, %v2446_v59  ;;  %v1511_v2 = vand.u32 2147483647, %v2446_v59 }
0x2728   :  { %v1529_v43 = vor.u32 1.1754944e-38, %v1528_v6 }
0x2729   :  { %v1514_v52 = vor.u32 1.1754944e-38, %v1513_v9  ;;  %v1884_v9 = vld [vmem:[#allocation3 + $0x198] ss:$0 sm:$0xff] }
0x272a   :  { %v1485_v22 = vpop.xlane.xlu1 %1484 }
0x272b   :  { %v2020_v23 = vpop.eup %2019  ;;  %v1864_v25 = vmul.f32 -1.442695, %v1485_v22 }
0x272c   :  { %v1500_v27 = vadd.f32 1.0, %v2020_v23  ;;  %v2022_v28 = vpop.eup %2021  ;;  %v1622_v23 = vld [vmem:[#allocation3 + $0x138] sm:$0xff] }
0x272d   :  { %2025 = vpow2.f32 %v1864_v25  ;;  %v2450_v29 = vpop.eup %2023  ;;  %v1518_v36 = vmul.f32 %v2022_v28, %v2444_v13  ;;  %vm1523_vm14 = vweird.f32 %v2022_v28  ;;  %v1623_v25 = vld [vmem:[#allocation3 + $0x140] sm:$0xff] }
0x272e   :  { %2027 = vrcp.f32 %v1500_v27  ;;  %v1503_v39 = vmul.f32 %v2450_v29, %v2446_v59  ;;  %v1543_v30 = vand.u32 2147483648, %v1500_v27  ;;  %vm1537_vm11 = vweird.f32 %v1500_v27  ;;  %vm2469_vm7 = vmor %vm1522_vm4, %vm1523_vm14 }
0x272f   :  { %v1519_v44 = vsub.f32 1.0, %v1518_v36  ;;  %v1541_v0 = vand.u32 2147483647, %v1500_v27  ;;  %vm1508_vm12 = vweird.f32 %v2450_v29  ;;  %vm1587_vm14 = vcmask 1045504   ;;  %v1660_v36 = vld [vmem:[#allocation3 + $0x168] sm:$0xff] }
0x2730   :  { %v1504_v51 = vsub.f32 1.0, %v1503_v39  ;;  %v1544_v33 = vor.u32 1.1754944e-38, %v1543_v30  ;;  %vm1626_vm4 = vcmask 130048  }
0x2731   :  { %v1520_v54 = vmul.f32 %v2022_v28, %v1519_v44  ;;  %vm1542_vm5 = vcmp.eq.f32.partialorder %v1541_v0, 8.507059e+37  ;;  %v1659_v44 = vld [vmem:[#allocation3 + $0x160] sm:$0xff] }
0x2732   :  { %v1505_v57 = vmul.f32 %v2450_v29, %v1504_v51 }
0x2733   :  { %v2026_v34 = vpop.eup %2025  ;;  %v1521_v31 = vadd.f32 %v2022_v28, %v1520_v54 }
0x2734   :  { %v2028_v35 = vpop.eup %2027  ;;  %v1501_v42 = vadd.f32 1.0, %v2026_v34  ;;  %v1506_v5 = vadd.f32 %v2450_v29, %v1505_v57  ;;  %v1662_v34 = vld [vmem:[#allocation3 + $0x178] sm:$0xff]  ;;  %v1691_v57 = vld [vmem:[#allocation3 + $0x188] sm:$0x3] }
0x2735   :  { %v1533_v37 = vmul.f32 %v2028_v35, %v1500_v27  ;;  %vm1538_vm9 = vweird.f32 %v2028_v35  ;;  %v1525_v38 = vsel %vm2469_vm7, %v2022_v28, %v1521_v31  ;;  %v1625_v27 = vpack.c.bf16 %v1623_v25, %v1622_v23 }
0x2736   :  { %2029 = vrcp.f32 %v1501_v42  ;;  %vm2458_vm13 = vmor %vm1537_vm11, %vm1538_vm9  ;;  %v1558_v4 = vand.u32 2147483648, %v1501_v42  ;;  %v1556_v16 = vand.u32 2147483647, %v1501_v42  ;;  %vm1552_vm6 = vweird.f32 %v1501_v42 }
0x2737   :  { %v1534_v40 = vsub.f32 1.0, %v1533_v37  ;;  %vm1509_vm11 = vmor %vm1507_vm10, %vm1508_vm12  ;;  %vm1578_vm10 = vcmp.eq.s32.totalorder %v1570_v14, %v2429_v1  ;;  %vm1583_vm12 = vcmask 228352   ;;  %1637 = vmatpush.bf16.msrb.mxu0 %v1625_v27  ;;  %v1661_v37 = vld [vmem:[#allocation3 + $0x170] sm:$0xff] }
0x2738   :  { %v1559_v60 = vor.u32 1.1754944e-38, %v1558_v4  ;;  %vm1557_vm9 = vcmp.eq.f32.partialorder %v1556_v16, 8.507059e+37  ;;  %v1510_v17 = vsel %vm1509_vm11, %v2450_v29, %v1506_v5  ;;  %v1667_v39 = vpack.c.bf16 %v1661_v37, %v1660_v36 }
0x2739   :  { %v1535_v46 = vmul.f32 %v2028_v35, %v1534_v40  ;;  %v1658_v40 = vld [vmem:[#allocation3 + $0x158] sm:$0xff] }
0x273b   :  { %v1536_v56 = vadd.f32 %v2028_v35, %v1535_v46  ;;  %1707 = vmatpush.msra.mxu0 %v2036_v41  ;;  %v1666_v46 = vpack.c.bf16 %v1659_v44, %v1658_v40 }
0x273c   :  { %v2030_v53 = vpop.eup %2029 }
0x273d   :  { %v1548_v55 = vmul.f32 %v2030_v53, %v1501_v42  ;;  %v1540_v7 = vsel %vm2458_vm13, %v2028_v35, %v1536_v56  ;;  %vm1553_vm3 = vweird.f32 %v2030_v53  ;;  %vm1527_vm13 = vcmp.eq.f32.partialorder %v1526_v21, 8.507059e+37  ;;  %1708 = vmatpush.msra.mxu0 %v2037_v45  ;;  %v1663_v35 = vld [vmem:[#allocation3 + $0x180] sm:$0xff]  ;;  %v1657_v56 = vld [vmem:[#allocation3 + $0x150] sm:$0xff] }
0x273e   :  { %v1545_v20 = vsel %vm1542_vm5, %v1544_v33, %v1540_v7  ;;  %vm1554_vm8 = vmor %vm1552_vm6, %vm1553_vm3  ;;  %v1530_v11 = vsel %vm1527_vm13, %v1529_v43, %v1525_v38  ;;  %vm1512_vm3 = vcmp.eq.f32.partialorder %v1511_v2, 8.507059e+37  ;;  %v1668_v42 = vpack.c.bf16 %v1663_v35, %v1662_v34  ;;  %v1772_v2 = vld [vmem:[#allocation3 + $0x1c0] sm:$0xff]  ;;  %v1771_v38 = vld [vmem:[#allocation3 + $0x1b8] sm:$0xff] }
0x273f   :  { %v1549_v63 = vsub.f32 1.0, %v1548_v55  ;;  %v1564_v12 = vmul.f32 %v1545_v20, %v1332_v62  ;;  %v1515_v13 = vsel %vm1512_vm3, %v1514_v52, %v1510_v17  ;;  %v1563_v26 = vmul.f32 %v1530_v11, %v1331_v47  ;;  %v2038_v47 = vld [vmem:[%s2517_s0 + $0x8] sm:$0xff] }
0x2740   :  { %v1562_v58 = vmul.f32 %v1515_v13, %v1330_v50  ;;  %v2099_v62 = vmov 0.0   ;;  %1709 = vmatpush.msra.mxu0 %v2038_v47  ;;  %v2039_v50 = vld [vmem:[%s2517_s0] sm:$0xff]  ;;  %v1656_v55 = vld [vmem:[#allocation3 + $0x148] sm:$0xff]  ;;  %s2100_s0 = smov [#allocation6]  }
0x2741   :  { %v1550_v48 = vmul.f32 %v2030_v53, %v1549_v63  ;;  %v1579_v22 = vsel %vm1578_vm10, 1.0, %v2099_v62  ;;  %v1665_v30 = vpack.c.bf16 %v1657_v56, %v1656_v55  ;;  %v1886_v17 = vld [vmem:[#allocation3 + $0x1c8] ss:$0 sm:$0xff]  ;;  %s1805_s6 = sshll.u32 %s2100_s0, 4  ;;  %s1806_s6 = int_to_ptr.vmem [resolvable:$true] %s1805_s6 }
0x2742   :  { %v1581_v24 = vpack.c.bf16 %v1563_v26, %v1562_v58  ;;  %1710 = vmatpush.msra.mxu0 %v2039_v50 }
0x2743   :  { %v1551_v8 = vadd.f32 %v2030_v53, %v1550_v48  ;;  %v1716_v48 = vld [vmem:[#allocation3 + $0x190] sm:$0xff] }
0x2744   :  { %1737 = vmatpush.msrb.mxu2 %v1716_v48 }
0x2745   :  { %v1555_v49 = vsel %vm1554_vm8, %v2030_v53, %v1551_v8  ;;  %v1744_v8 = vld [vmem:[#allocation3 + $0x1a8] sm:$0xff] }
0x2746   :  { %v1560_v15 = vsel %vm1557_vm9, %v1559_v60, %v1555_v49  ;;  %1764 = vmatpush.msrb.mxu3 %v1744_v8  ;;  %v1885_v49 = vld [vmem:[#allocation3 + $0x1b0] ss:$0 sm:$0xff] }
0x2747   :  { %v1565_v18 = vmul.f32 %v1560_v15, %v1333_v61  ;;  %v1580_v61 = vpack.c.bf16 %v1579_v22, %v1579_v22 }
0x2749   :  { %v1582_v19 = vpack.c.bf16 %v1565_v18, %v1564_v12 }
0x274b   :  { %v1589_v59 = vsel %vm1587_vm14, %v1582_v19, 0 }
0x274c   :  { %1597 = vmatpush.bf16.msrb.mxu1 %v1589_v59 }
0x2750   :  { %1598 = vmatpush.bf16.msrb.mxu1 %v1581_v24 }
0x2753   :  { %1865 = vmatmul.msk.bf16.vlgmr.msrb.gmra.mxu1 %vm1583_vm12, %v1580_v61 }
0x2754   :  { %1676 = vmatpush.bf16.msra.mxu1 %v1668_v42 }
0x2758   :  { %1677 = vmatpush.bf16.msra.mxu1 %v1667_v39 }
0x275c   :  { %1678 = vmatpush.bf16.msra.mxu1 %v1666_v46 }
0x2760   :  { %1679 = vmatpush.bf16.msra.mxu1 %v1665_v30 }
0x27d0   :  { %v1600_v1 = vpop.f32.mrf.mxu1 }
0x27d1   :  { %v1605_v28 = vrot.slane %v1600_v1, 1 }
0x27d3   :  { %1606 = vrot.lane.b32.xlu0 %v1605_v28, %s2094_s15 }
0x27d8   :  { %v1602_v29 = vpop.f32.mrf.mxu1 }
0x2845   :  { %v1607_v51 = vpop.permute.xlu0 %1606 }
0x2846   :  { %v1609_v53 = vsel %vm73_vm2, %v1600_v1, %v1607_v51 }
0x2847   :  { %v1624_v54 = vpack.c.bf16 %v1609_v53, %v1609_v53 }
0x2849   :  { %1866 = vmatmul.msk.bf16.vlgmr.msrb.gmra.mxu0 %vm1626_vm4, %v1624_v54 }
0x284a   :  { %1792 = vmatpush.msrb.mxu0 %v1772_v2 }
0x284c   :  { %1793 = vmatpush.msrb.mxu0 %v1771_v38 }
0x2859   :  { %1869 = vmatmul.msk.f32.vlgmr.msra.gmra.mxu0 %vm41_vm0, %v1691_v57  ;;  %vm1798_vm0 = vcmask 25600  }
0x28c6   :  { %v1639_v63 = vpop.f32.mrf.mxu0 }
0x28c7   :  { %v1653_v0 = vadd.f32 %v2403_v32, %v1639_v63  ;;  %v1743_v32 = vld [vmem:[#allocation3 + $0x1a0] sm:$0xff] }
0x28c8   :  { %1765 = vmatpush.msrb.mxu3 %v1743_v32 }
0x28c9   :  { %v1664_v3 = vpack.c.bf16 %v1653_v0, %v1653_v0 }
0x28cb   :  { %1868 = vmatmul.msk.bf16.vlgmr.msra.gmra.mxu1 %vm1354_vm15, %v1664_v3 }
0x28ce   :  { %v1641_v4 = vpop.f32.mrf.mxu0 }
0x28d6   :  { %v1712_v16 = vpop.f32.mrf.mxu0 }
0x2948   :  { %v1681_v31 = vpop.f32.mrf.mxu1 }
0x2949   :  { %v1686_v6 = vrot.slane %v1681_v31, 7 }
0x294b   :  { %1687 = vrot.lane.b32.xlu1 %v1686_v6, %s2098_s25 }
0x2950   :  { %v1683_v7 = vpop.f32.mrf.mxu1 }
0x29bd   :  { %v1688_v33 = vpop.permute.xlu1 %1687 }
0x29be   :  { %v1690_v5 = vsel %vm1376_vm1, %v1681_v31, %v1688_v33 }
0x29bf   :  { %v1715_v21 = vadd.f32 %v1712_v16, %v1690_v5 }
0x29c1   :  { %1870 = vmatmul.msk.f32.vlgmr.msrb.gmra.mxu2 %vm73_vm2, %v1715_v21 }
0x2a44   :  { %v1739_v10 = vpop.f32.mrf.mxu2 }
0x2a45   :  { %v1740_v20 = vadd.f32 %v1884_v9, %v1739_v10 }
0x2a47   :  { %2031 = vtanh.f32 %v1740_v20 }
0x2a4d   :  { %v2032_v60 = vpop.eup %2031 }
0x2a4e   :  { %1871 = vmatmul.msk.f32.vlgmr.msrb.gmra.mxu3 %vm1626_vm4, %v2032_v60 }
0x2ad1   :  { %v1767_v43 = vpop.f32.mrf.mxu3 }
0x2ad2   :  { %v1768_v14 = vadd.f32 %v1885_v49, %v1767_v43 }
0x2ad4   :  { %2033 = vtanh.f32 %v1768_v14 }
0x2ada   :  { %v2034_v15 = vpop.eup %2033 }
0x2adb   :  { %1872 = vmatmul.msk.f32.vlgmr.msrb.gmra.mxu0 %vm1626_vm4, %v2034_v15 }
0x2b58   :  { %v1795_v12 = vpop.f32.mrf.mxu0 }
0x2b59   :  { %v1796_v18 = vadd.f32 %v1886_v17, %v1795_v12 }
0x2b5b   :  { %1799 = vst.msk [vmem:[#allocation6] sm:$0x3] %vm1798_vm0, %v1796_v18 }
0x2b5c   :  { %1810 = dma.vmem_to_hbm [thread:$0]  %s1806_s6, 32, %s1808_s9, [#allocation5]  }
0x2b5d   :  { %2090 = dma.done.wait [#allocation5], 32  }
0x2b5e   :  { %2091 = vsyncadd [#allocation5], 4294967264 }
0x2b5f   :  { %1815 = vsyncpa [#allocation4], 1 }
0x2b60   :  { %1816 = vsyncpa [#allocation5], 1 }

</bundles_post_ra>
